<compile_context>
chip_gen: v6e
topology: v6e:2x2x1
jax: 0.10.0
libtpu: 0.0.40
codegen_flags: <defaults>
</compile_context>

<pallas_src>
import jax
import jax.numpy as jnp
import numpy as np
from jax import lax
from jax.experimental import pallas as pl
from jax.experimental.pallas import tpu as pltpu

LANES = 128
VMEM_LIMIT_BYTES = 32 * 1024 * 1024


def _cdiv(a, b):
    return -(-a // b)


def _round_up(x, m):
    return _cdiv(x, m) * m


# ----------------------------- fused Pallas kernel --------------------------------- #

def _lenet_kernel(x_ref, a1_ref, b1_ref, w2_ref, b2_ref,
                  fw1_ref, fb1_ref, fw2_ref, fb2_ref, fw3_ref, fb3_ref, o_ref):
    """Fused LeNet forward for NB images (everything stays in VMEM).

    x_ref  : (NB*32, 32) bf16  padded 32x32 images, rows ordered (image, row%4, row//4)
    a1_ref : (32, 1280)  bf16  conv1 band matrix; lane block (ki1,dq1), lane q*6+c
    b1_ref : (1, 128)    f32   conv1 bias at lane q*6+c
    w2_ref : (128, 1280) bf16  conv2 band matrix; row q*6+cin, lane block (ki2,dq2),
                               lane pq*16+co
    b2_ref : (1, 128)    f32   conv2 bias at lane pq*16+co
    fw1_ref: (5,128,128) bf16  fc1 weights [pr, pq*16+co, j] (torch flatten folded in)
    fw2_ref/fw3_ref: (128,128) bf16 ; fb1/fb2/fb3_ref: (1,128) f32
    o_ref  : (NB, 128)   f32   logits (lane-padded to 128)
    """
    nb = o_ref.shape[0]
    f32 = jnp.float32

    # ---- conv1: one banded MXU matmul over the width(lane) dimension -------------
    y = jnp.dot(x_ref[...], a1_ref[...], preferred_element_type=f32)   # (NB*32, 1280)
    y = y.reshape(nb, 4, 8, 10 * LANES)     # rows -> (image, img_row % 4, img_row // 4)

    # ---- conv1 row taps + bias + ReLU + 2x2 maxpool (rows kept split by parity) --
    h1_rows = []
    for p1 in range(2):                     # parity of the pooled (14-row) output row
        pooled = None
        for dr1 in range(2):
            for dq1 in range(2):
                acc = None
                for ki1 in range(5):
                    s = 2 * p1 + dr1 + ki1          # image row = 4*r1c + s
                    blk = ki1 * 2 + dq1
                    sl = y[:, s % 4, s // 4:s // 4 + 7, blk * LANES:(blk + 1) * LANES]
                    acc = sl if acc is None else acc + sl
                pooled = acc if pooled is None else jnp.maximum(pooled, acc)
        hp = jnp.maximum(pooled + b1_ref[...], 0.0)                    # (NB, 7, 128)
        h1_rows += [hp, jnp.zeros((nb, 1, LANES), f32)]                # pad 7 -> 8 rows
    h1 = jnp.concatenate(h1_rows, axis=1)                              # (NB, 16, 128)
    h1 = h1.reshape(nb * 16, LANES).astype(jnp.bfloat16)

    # ---- conv2: one banded MXU matmul over the (col, cin) lane dimension ----------
    z = jnp.dot(h1, w2_ref[...], preferred_element_type=f32)           # (NB*16, 1280)
    z = z.reshape(nb, 2, 8, 10 * LANES)

    pooled2 = None
    for dr2 in range(2):
        for dq2 in range(2):
            acc = None
            for ki2 in range(5):
                p1 = (dr2 + ki2) % 2
                off = (dr2 + ki2) // 2
                blk = ki2 * 2 + dq2
                sl = z[:, p1, off:off + 5, blk * LANES:(blk + 1) * LANES]
                acc = sl if acc is None else acc + sl
            pooled2 = acc if pooled2 is None else jnp.maximum(pooled2, acc)
    h2 = jnp.maximum(pooled2 + b2_ref[...], 0.0).astype(jnp.bfloat16)   # (NB, 5, 128)

    # ---- flatten + fc1 (5 accumulated matmuls, no lane concat) + fc2 + fc3 --------
    acc = None
    for pr in range(5):
        part = jnp.dot(h2[:, pr, :], fw1_ref[pr], preferred_element_type=f32)
        acc = part if acc is None else acc + part
    hfc = jnp.maximum(acc + fb1_ref[...], 0.0).astype(jnp.bfloat16)      # (NB, 128)
    hfc = jnp.maximum(
        jnp.dot(hfc, fw2_ref[...], preferred_element_type=f32) + fb2_ref[...], 0.0)
    hfc = hfc.astype(jnp.bfloat16)
    o_ref[...] = jnp.dot(hfc, fw3_ref[...], preferred_element_type=f32) + fb3_ref[...]


# ----------------------------- pallas_call wrapper ---------------------------------- #

def _resident_spec(shape):
    """Constant-index weight operand; single buffer (no redundant double buffering)."""
    index_map = lambda i: (0,) * len(shape)
    try:
        return pl.BlockSpec(shape, index_map, pipeline_mode=pl.Buffered(1))
    except Exception:                       # older jax: no pipeline_mode / Buffered
        return pl.BlockSpec(shape, index_map)


def _lenet_pallas_call(x_flat, p, nb, npad):
    nsteps = npad // nb
    weight_names = ("a1", "b1", "w2", "b2", "fw1", "fb1", "fw2", "fb2", "fw3", "fb3")
    in_specs = [pl.BlockSpec((nb * 32, 32), lambda i: (i, 0))]
    in_specs += [_resident_spec(p[k].shape) for k in weight_names]
    return pl.pallas_call(
        _lenet_kernel,
        out_shape=jax.ShapeDtypeStruct((npad, LANES), jnp.float32),
        grid_spec=pltpu.PrefetchScalarGridSpec(
            num_scalar_prefetch=0,
            grid=(nsteps,),
            in_specs=in_specs,
            out_specs=pl.BlockSpec((nb, LANES), lambda i: (i, 0)),
        ),
        compiler_params=pltpu.CompilerParams(
            dimension_semantics=("parallel",),
            vmem_limit_bytes=VMEM_LIMIT_BYTES,
        ),
    )(x_flat, *(p[k] for k in weight_names))


def _tensorcores_per_chip():
    try:
        kind = jax.devices()[0].device_kind.lower()
    except Exception:
        return 1
    # v7x exposes two TensorCores behind one device; v5e/v6e have one.
    return 2 if ("v7" in kind or "7x" in kind or "tpu7" in kind) else 1


def _pick_batch_tiling(n):
    n_tc = _tensorcores_per_chip()
    cap = 48 if n_tc > 1 else 64          # VMEM-derived cap (~0.3 MB live per image)
    if n_tc == 1 and n <= cap:
        return n, n                       # whole batch in one grid step
    steps = max(n_tc, _cdiv(n, cap))
    nb = _round_up(_cdiv(n, steps), 8)    # (8,128) rule for the (nb,128) output block
    npad = _round_up(n, nb)
    return nb, npad


def lenet_forward(x_nchw, params, num_classes=10):
    n, c_in, h, w = x_nchw.shape
    # TODO(synk): the fused banded-matmul kernel is wired for the MNIST instantiation
    # (channel=1 -> padding=2, 28x28 input); channel>1 (padding=0) is not plumbed here.
    assert c_in == 1 and h == 28 and w == 28 and num_classes <= LANES

    nb, npad = _pick_batch_tiling(n)
    x = x_nchw[:, 0].astype(jnp.bfloat16)                    # (N, 28, 28)
    x = jnp.pad(x, ((0, npad - n), (2, 2), (2, 2)))          # (Npad, 32, 32)
    # Split rows into residue-mod-4 classes so every in-kernel row window (conv tap +
    # pool offset at both stages) is a contiguous slice.
    x = jnp.transpose(x.reshape(npad, 8, 4, 32), (0, 2, 1, 3))   # [n, row%4, row//4, col]
    x = x.reshape(npad * 32, 32)
    logits = _lenet_pallas_call(x, params, nb, npad)             # (Npad, 128) f32
    return logits[:n, :num_classes]


# ----------------------------- params & pure-JAX reference -------------------------- #

def pack_params(t, num_classes):
    """Re-pack torch-layout LeNet weights into the kernel's banded / lane-padded layouts."""
    w1 = np.asarray(t["w1"], np.float32)      # (6, 1, 5, 5)   [co, ci, kh, kw]
    w2 = np.asarray(t["w2"], np.float32)      # (16, 6, 5, 5)
    fc1_w = np.asarray(t["fc1_w"], np.float32)
    fc2_w = np.asarray(t["fc2_w"], np.float32)
    fc3_w = np.asarray(t["fc3_w"], np.float32)

    # conv1 band matrix: row = image column, lane block (ki1, dq1), lane = q*6 + c.
    a1 = np.zeros((32, 10 * LANES), np.float32)
    for ki in range(5):
        for dq in range(2):
            col0 = (ki * 2 + dq) * LANES
            for q in range(14):
                for kw in range(5):
                    a1[2 * q + dq + kw, col0 + q * 6:col0 + q * 6 + 6] = w1[:, 0, ki, kw]
    b1l = np.zeros((1, LANES), np.float32)
    b1l[0, :84] = np.tile(np.asarray(t["b1"], np.float32), 14)

    # conv2 band matrix: row = h1 lane (q*6+cin), lane block (ki2, dq2), lane = pq*16+co.
    w2b = np.zeros((LANES, 10 * LANES), np.float32)
    for ki in range(5):
        for dq in range(2):
            col0 = (ki * 2 + dq) * LANES
            for pq in range(5):
                for kw in range(5):
                    q = 2 * pq + dq + kw
                    for cin in range(6):
                        w2b[q * 6 + cin, col0 + pq * 16:col0 + pq * 16 + 16] = w2[:, cin, ki, kw]
    b2l = np.zeros((1, LANES), np.float32)
    b2l[0, :80] = np.tile(np.asarray(t["b2"], np.float32), 5)

    # fc1: fold torch's NCHW flatten (index co*25 + pr*5 + pq) into [pr, pq*16+co, j].
    fw1 = np.zeros((5, LANES, LANES), np.float32)
    for pr in range(5):
        for pq in range(5):
            for co in range(16):
                fw1[pr, pq * 16 + co, :120] = fc1_w[:, co * 25 + pr * 5 + pq]
    fb1 = np.zeros((1, LANES), np.float32); fb1[0, :120] = np.asarray(t["fc1_b"])
    fw2 = np.zeros((LANES, LANES), np.float32); fw2[:120, :84] = fc2_w.T
    fb2 = np.zeros((1, LANES), np.float32); fb2[0, :84] = np.asarray(t["fc2_b"])
    fw3 = np.zeros((LANES, LANES), np.float32); fw3[:84, :num_classes] = fc3_w.T
    fb3 = np.zeros((1, LANES), np.float32); fb3[0, :num_classes] = np.asarray(t["fc3_b"])

    bf16 = lambda a: jnp.asarray(a, jnp.bfloat16)
    f32 = lambda a: jnp.asarray(a, jnp.float32)
    return dict(a1=bf16(a1), b1=f32(b1l), w2=bf16(w2b), b2=f32(b2l),
                fw1=bf16(fw1), fb1=f32(fb1), fw2=bf16(fw2), fb2=f32(fb2),
                fw3=bf16(fw3), fb3=f32(fb3))


def init_params(key, channel=1, num_classes=10):
    assert channel == 1
    ks = jax.random.split(key, 10)
    u = lambda k, shape, s=0.1: jax.random.uniform(k, shape, jnp.float32, -s, s)
    torch_like = dict(
        w1=u(ks[0], (6, channel, 5, 5)), b1=u(ks[1], (6,)),
        w2=u(ks[2], (16, 6, 5, 5)),      b2=u(ks[3], (16,)),
        fc1_w=u(ks[4], (120, 16 * 5 * 5)), fc1_b=u(ks[5], (120,)),
        fc2_w=u(ks[6], (84, 120)),         fc2_b=u(ks[7], (84,)),
        fc3_w=u(ks[8], (num_classes, 84)), fc3_b=u(ks[9], (num_classes,)),
    )
    return pack_params(torch_like, num_classes), torch_like


def ref_forward(x_nchw, t):
    dn = ('NCHW', 'OIHW', 'NCHW')
    pad = [(2, 2), (2, 2)] if t["w1"].shape[1] == 1 else [(0, 0), (0, 0)]
    y = lax.conv_general_dilated(x_nchw, t["w1"], (1, 1), pad,
                                 dimension_numbers=dn) + t["b1"][None, :, None, None]
    y = jnp.maximum(y, 0.0)
    y = lax.reduce_window(y, -jnp.inf, lax.max, (1, 1, 2, 2), (1, 1, 2, 2), 'VALID')
    y = lax.conv_general_dilated(y, t["w2"], (1, 1), 'VALID',
                                 dimension_numbers=dn) + t["b2"][None, :, None, None]
    y = jnp.maximum(y, 0.0)
    y = lax.reduce_window(y, -jnp.inf, lax.max, (1, 1, 2, 2), (1, 1, 2, 2), 'VALID')
    flat = y.reshape(y.shape[0], -1)
    h = jnp.maximum(flat @ t["fc1_w"].T + t["fc1_b"], 0.0)
    h = jnp.maximum(h @ t["fc2_w"].T + t["fc2_b"], 0.0)
    return h @ t["fc3_w"].T + t["fc3_b"]


# ----------------------------- main -------------------------------------------------- #

if __name__ == "__main__":
    key = jax.random.PRNGKey(0)
    kx, kp = jax.random.split(key)
    channel, num_classes = 1, 10                     # MNIST: 1x28x28, 10 classes
    params, torch_like = init_params(kp, channel, num_classes)
    fwd = jax.jit(lambda xb: lenet_forward(xb, params, num_classes=num_classes))

    # Small batch (single fused kernel launch).
    x = jax.random.normal(kx, (2, channel, 28, 28), jnp.float32)
    out = jax.block_until_ready(fwd(x))
    ref = jax.block_until_ready(ref_forward(x, torch_like))
    assert out.shape == (2, num_classes)
    np.testing.assert_allclose(np.asarray(out), np.asarray(ref), rtol=1e-2, atol=1e-2)

    # Larger batch (exercises the generation-aware batch tiling / parallel grid).
    x2 = jax.random.normal(jax.random.PRNGKey(1), (32, channel, 28, 28), jnp.float32)
    out2 = jax.block_until_ready(fwd(x2))
    ref2 = jax.block_until_ready(ref_forward(x2, torch_like))
    np.testing.assert_allclose(np.asarray(out2), np.asarray(ref2), rtol=1e-2, atol=1e-2)

    print("KERNEL_OK")
</pallas_src>

<mosaic_0001>
module attributes {stable_mosaic.version = 11 : i64} {
  func.func @_lenet_kernel(%arg0: i32, %arg1: memref<64x32xbf16, #tpu.memory_space<vmem>>, %arg2: memref<32x1280xbf16, #tpu.memory_space<vmem>>, %arg3: memref<1x128xf32, #tpu.memory_space<vmem>>, %arg4: memref<128x1280xbf16, #tpu.memory_space<vmem>>, %arg5: memref<1x128xf32, #tpu.memory_space<vmem>>, %arg6: memref<5x128x128xbf16, #tpu.memory_space<vmem>>, %arg7: memref<1x128xf32, #tpu.memory_space<vmem>>, %arg8: memref<128x128xbf16, #tpu.memory_space<vmem>>, %arg9: memref<1x128xf32, #tpu.memory_space<vmem>>, %arg10: memref<128x128xbf16, #tpu.memory_space<vmem>>, %arg11: memref<1x128xf32, #tpu.memory_space<vmem>>, %arg12: memref<2x128xf32, #tpu.memory_space<vmem>>) attributes {dimension_semantics = [#tpu.dimension_semantics<parallel>], iteration_bounds = array<i64: 1>, scalar_prefetch = 0 : i64, scratch_operands = 0 : i64, tpu.core_type = #tpu.core_type<tc>, window_params = [{transform_indices = @transform_0, window_bounds = array<i64: 64, 32>}, {pipeline_mode = #tpu.pipeline_mode<synchronous>, transform_indices = @transform_1, window_bounds = array<i64: 32, 1280>}, {pipeline_mode = #tpu.pipeline_mode<synchronous>, transform_indices = @transform_2, window_bounds = array<i64: 1, 128>}, {pipeline_mode = #tpu.pipeline_mode<synchronous>, transform_indices = @transform_3, window_bounds = array<i64: 128, 1280>}, {pipeline_mode = #tpu.pipeline_mode<synchronous>, transform_indices = @transform_4, window_bounds = array<i64: 1, 128>}, {pipeline_mode = #tpu.pipeline_mode<synchronous>, transform_indices = @transform_5, window_bounds = array<i64: 5, 128, 128>}, {pipeline_mode = #tpu.pipeline_mode<synchronous>, transform_indices = @transform_6, window_bounds = array<i64: 1, 128>}, {pipeline_mode = #tpu.pipeline_mode<synchronous>, transform_indices = @transform_7, window_bounds = array<i64: 128, 128>}, {pipeline_mode = #tpu.pipeline_mode<synchronous>, transform_indices = @transform_8, window_bounds = array<i64: 1, 128>}, {pipeline_mode = #tpu.pipeline_mode<synchronous>, transform_indices = @transform_9, window_bounds = array<i64: 128, 128>}, {pipeline_mode = #tpu.pipeline_mode<synchronous>, transform_indices = @transform_10, window_bounds = array<i64: 1, 128>}, {transform_indices = @transform_11, window_bounds = array<i64: 2, 128>}]} {
    %c0 = arith.constant 0 : index
    %c0_0 = arith.constant 0 : index
    %0 = vector.load %arg1[%c0, %c0_0] : memref<64x32xbf16, #tpu.memory_space<vmem>>, vector<64x32xbf16>
    %c0_1 = arith.constant 0 : index
    %c0_2 = arith.constant 0 : index
    %1 = vector.load %arg2[%c0_1, %c0_2] : memref<32x1280xbf16, #tpu.memory_space<vmem>>, vector<32x1280xbf16>
    %cst = arith.constant dense<0.000000e+00> : vector<64x1280xf32>
    %2 = tpu.matmul %0, %1, %cst {dimension_numbers = #tpu.dot_dimension_numbers<[1], [0], [0], [1], [0, 0, 1, 1], [], []>} : vector<64x32xbf16>, vector<32x1280xbf16>, vector<64x1280xf32> -> vector<64x1280xf32>
    %3 = vector.shape_cast %2 : vector<64x1280xf32> to vector<2x4x8x1280xf32>
    %4 = vector.extract_strided_slice %3 {offsets = [0, 0, 0, 0], sizes = [2, 1, 7, 128], strides = [1, 1, 1, 1]} : vector<2x4x8x1280xf32> to vector<2x1x7x128xf32>
    %5 = vector.shape_cast %4 : vector<2x1x7x128xf32> to vector<2x7x128xf32>
    %6 = vector.extract_strided_slice %3 {offsets = [0, 1, 0, 256], sizes = [2, 1, 7, 128], strides = [1, 1, 1, 1]} : vector<2x4x8x1280xf32> to vector<2x1x7x128xf32>
    %7 = vector.shape_cast %6 : vector<2x1x7x128xf32> to vector<2x7x128xf32>
    %8 = arith.addf %5, %7 : vector<2x7x128xf32>
    %9 = vector.extract_strided_slice %3 {offsets = [0, 2, 0, 512], sizes = [2, 1, 7, 128], strides = [1, 1, 1, 1]} : vector<2x4x8x1280xf32> to vector<2x1x7x128xf32>
    %10 = vector.shape_cast %9 : vector<2x1x7x128xf32> to vector<2x7x128xf32>
    %11 = arith.addf %8, %10 : vector<2x7x128xf32>
    %12 = vector.extract_strided_slice %3 {offsets = [0, 3, 0, 768], sizes = [2, 1, 7, 128], strides = [1, 1, 1, 1]} : vector<2x4x8x1280xf32> to vector<2x1x7x128xf32>
    %13 = vector.shape_cast %12 : vector<2x1x7x128xf32> to vector<2x7x128xf32>
    %14 = arith.addf %11, %13 : vector<2x7x128xf32>
    %15 = vector.extract_strided_slice %3 {offsets = [0, 0, 1, 1024], sizes = [2, 1, 7, 128], strides = [1, 1, 1, 1]} : vector<2x4x8x1280xf32> to vector<2x1x7x128xf32>
    %16 = vector.shape_cast %15 : vector<2x1x7x128xf32> to vector<2x7x128xf32>
    %17 = arith.addf %14, %16 : vector<2x7x128xf32>
    %18 = vector.extract_strided_slice %3 {offsets = [0, 0, 0, 128], sizes = [2, 1, 7, 128], strides = [1, 1, 1, 1]} : vector<2x4x8x1280xf32> to vector<2x1x7x128xf32>
    %19 = vector.shape_cast %18 : vector<2x1x7x128xf32> to vector<2x7x128xf32>
    %20 = vector.extract_strided_slice %3 {offsets = [0, 1, 0, 384], sizes = [2, 1, 7, 128], strides = [1, 1, 1, 1]} : vector<2x4x8x1280xf32> to vector<2x1x7x128xf32>
    %21 = vector.shape_cast %20 : vector<2x1x7x128xf32> to vector<2x7x128xf32>
    %22 = arith.addf %19, %21 : vector<2x7x128xf32>
    %23 = vector.extract_strided_slice %3 {offsets = [0, 2, 0, 640], sizes = [2, 1, 7, 128], strides = [1, 1, 1, 1]} : vector<2x4x8x1280xf32> to vector<2x1x7x128xf32>
    %24 = vector.shape_cast %23 : vector<2x1x7x128xf32> to vector<2x7x128xf32>
    %25 = arith.addf %22, %24 : vector<2x7x128xf32>
    %26 = vector.extract_strided_slice %3 {offsets = [0, 3, 0, 896], sizes = [2, 1, 7, 128], strides = [1, 1, 1, 1]} : vector<2x4x8x1280xf32> to vector<2x1x7x128xf32>
    %27 = vector.shape_cast %26 : vector<2x1x7x128xf32> to vector<2x7x128xf32>
    %28 = arith.addf %25, %27 : vector<2x7x128xf32>
    %29 = vector.extract_strided_slice %3 {offsets = [0, 0, 1, 1152], sizes = [2, 1, 7, 128], strides = [1, 1, 1, 1]} : vector<2x4x8x1280xf32> to vector<2x1x7x128xf32>
    %30 = vector.shape_cast %29 : vector<2x1x7x128xf32> to vector<2x7x128xf32>
    %31 = arith.addf %28, %30 : vector<2x7x128xf32>
    %32 = arith.maximumf %17, %31 : vector<2x7x128xf32>
    %33 = vector.extract_strided_slice %3 {offsets = [0, 1, 0, 0], sizes = [2, 1, 7, 128], strides = [1, 1, 1, 1]} : vector<2x4x8x1280xf32> to vector<2x1x7x128xf32>
    %34 = vector.shape_cast %33 : vector<2x1x7x128xf32> to vector<2x7x128xf32>
    %35 = vector.extract_strided_slice %3 {offsets = [0, 2, 0, 256], sizes = [2, 1, 7, 128], strides = [1, 1, 1, 1]} : vector<2x4x8x1280xf32> to vector<2x1x7x128xf32>
    %36 = vector.shape_cast %35 : vector<2x1x7x128xf32> to vector<2x7x128xf32>
    %37 = arith.addf %34, %36 : vector<2x7x128xf32>
    %38 = vector.extract_strided_slice %3 {offsets = [0, 3, 0, 512], sizes = [2, 1, 7, 128], strides = [1, 1, 1, 1]} : vector<2x4x8x1280xf32> to vector<2x1x7x128xf32>
    %39 = vector.shape_cast %38 : vector<2x1x7x128xf32> to vector<2x7x128xf32>
    %40 = arith.addf %37, %39 : vector<2x7x128xf32>
    %41 = vector.extract_strided_slice %3 {offsets = [0, 0, 1, 768], sizes = [2, 1, 7, 128], strides = [1, 1, 1, 1]} : vector<2x4x8x1280xf32> to vector<2x1x7x128xf32>
    %42 = vector.shape_cast %41 : vector<2x1x7x128xf32> to vector<2x7x128xf32>
    %43 = arith.addf %40, %42 : vector<2x7x128xf32>
    %44 = vector.extract_strided_slice %3 {offsets = [0, 1, 1, 1024], sizes = [2, 1, 7, 128], strides = [1, 1, 1, 1]} : vector<2x4x8x1280xf32> to vector<2x1x7x128xf32>
    %45 = vector.shape_cast %44 : vector<2x1x7x128xf32> to vector<2x7x128xf32>
    %46 = arith.addf %43, %45 : vector<2x7x128xf32>
    %47 = arith.maximumf %32, %46 : vector<2x7x128xf32>
    %48 = vector.extract_strided_slice %3 {offsets = [0, 1, 0, 128], sizes = [2, 1, 7, 128], strides = [1, 1, 1, 1]} : vector<2x4x8x1280xf32> to vector<2x1x7x128xf32>
    %49 = vector.shape_cast %48 : vector<2x1x7x128xf32> to vector<2x7x128xf32>
    %50 = vector.extract_strided_slice %3 {offsets = [0, 2, 0, 384], sizes = [2, 1, 7, 128], strides = [1, 1, 1, 1]} : vector<2x4x8x1280xf32> to vector<2x1x7x128xf32>
    %51 = vector.shape_cast %50 : vector<2x1x7x128xf32> to vector<2x7x128xf32>
    %52 = arith.addf %49, %51 : vector<2x7x128xf32>
    %53 = vector.extract_strided_slice %3 {offsets = [0, 3, 0, 640], sizes = [2, 1, 7, 128], strides = [1, 1, 1, 1]} : vector<2x4x8x1280xf32> to vector<2x1x7x128xf32>
    %54 = vector.shape_cast %53 : vector<2x1x7x128xf32> to vector<2x7x128xf32>
    %55 = arith.addf %52, %54 : vector<2x7x128xf32>
    %56 = vector.extract_strided_slice %3 {offsets = [0, 0, 1, 896], sizes = [2, 1, 7, 128], strides = [1, 1, 1, 1]} : vector<2x4x8x1280xf32> to vector<2x1x7x128xf32>
    %57 = vector.shape_cast %56 : vector<2x1x7x128xf32> to vector<2x7x128xf32>
    %58 = arith.addf %55, %57 : vector<2x7x128xf32>
    %59 = vector.extract_strided_slice %3 {offsets = [0, 1, 1, 1152], sizes = [2, 1, 7, 128], strides = [1, 1, 1, 1]} : vector<2x4x8x1280xf32> to vector<2x1x7x128xf32>
    %60 = vector.shape_cast %59 : vector<2x1x7x128xf32> to vector<2x7x128xf32>
    %61 = arith.addf %58, %60 : vector<2x7x128xf32>
    %62 = arith.maximumf %47, %61 : vector<2x7x128xf32>
    %c0_3 = arith.constant 0 : index
    %c0_4 = arith.constant 0 : index
    %63 = vector.load %arg3[%c0_3, %c0_4] : memref<1x128xf32, #tpu.memory_space<vmem>>, vector<1x128xf32>
    %64 = vector.shape_cast %63 : vector<1x128xf32> to vector<1x1x128xf32>
    %65 = vector.broadcast %64 : vector<1x1x128xf32> to vector<2x7x128xf32>
    %66 = arith.addf %62, %65 : vector<2x7x128xf32>
    %cst_5 = arith.constant 0.000000e+00 : f32
    %67 = vector.broadcast %cst_5 : f32 to vector<2x7x128xf32>
    %68 = arith.maximumf %66, %67 : vector<2x7x128xf32>
    %cst_6 = arith.constant 0.000000e+00 : f32
    %69 = vector.broadcast %cst_6 : f32 to vector<2x1x128xf32>
    %70 = vector.extract_strided_slice %3 {offsets = [0, 2, 0, 0], sizes = [2, 1, 7, 128], strides = [1, 1, 1, 1]} : vector<2x4x8x1280xf32> to vector<2x1x7x128xf32>
    %71 = vector.shape_cast %70 : vector<2x1x7x128xf32> to vector<2x7x128xf32>
    %72 = vector.extract_strided_slice %3 {offsets = [0, 3, 0, 256], sizes = [2, 1, 7, 128], strides = [1, 1, 1, 1]} : vector<2x4x8x1280xf32> to vector<2x1x7x128xf32>
    %73 = vector.shape_cast %72 : vector<2x1x7x128xf32> to vector<2x7x128xf32>
    %74 = arith.addf %71, %73 : vector<2x7x128xf32>
    %75 = vector.extract_strided_slice %3 {offsets = [0, 0, 1, 512], sizes = [2, 1, 7, 128], strides = [1, 1, 1, 1]} : vector<2x4x8x1280xf32> to vector<2x1x7x128xf32>
    %76 = vector.shape_cast %75 : vector<2x1x7x128xf32> to vector<2x7x128xf32>
    %77 = arith.addf %74, %76 : vector<2x7x128xf32>
    %78 = vector.extract_strided_slice %3 {offsets = [0, 1, 1, 768], sizes = [2, 1, 7, 128], strides = [1, 1, 1, 1]} : vector<2x4x8x1280xf32> to vector<2x1x7x128xf32>
    %79 = vector.shape_cast %78 : vector<2x1x7x128xf32> to vector<2x7x128xf32>
    %80 = arith.addf %77, %79 : vector<2x7x128xf32>
    %81 = vector.extract_strided_slice %3 {offsets = [0, 2, 1, 1024], sizes = [2, 1, 7, 128], strides = [1, 1, 1, 1]} : vector<2x4x8x1280xf32> to vector<2x1x7x128xf32>
    %82 = vector.shape_cast %81 : vector<2x1x7x128xf32> to vector<2x7x128xf32>
    %83 = arith.addf %80, %82 : vector<2x7x128xf32>
    %84 = vector.extract_strided_slice %3 {offsets = [0, 2, 0, 128], sizes = [2, 1, 7, 128], strides = [1, 1, 1, 1]} : vector<2x4x8x1280xf32> to vector<2x1x7x128xf32>
    %85 = vector.shape_cast %84 : vector<2x1x7x128xf32> to vector<2x7x128xf32>
    %86 = vector.extract_strided_slice %3 {offsets = [0, 3, 0, 384], sizes = [2, 1, 7, 128], strides = [1, 1, 1, 1]} : vector<2x4x8x1280xf32> to vector<2x1x7x128xf32>
    %87 = vector.shape_cast %86 : vector<2x1x7x128xf32> to vector<2x7x128xf32>
    %88 = arith.addf %85, %87 : vector<2x7x128xf32>
    %89 = vector.extract_strided_slice %3 {offsets = [0, 0, 1, 640], sizes = [2, 1, 7, 128], strides = [1, 1, 1, 1]} : vector<2x4x8x1280xf32> to vector<2x1x7x128xf32>
    %90 = vector.shape_cast %89 : vector<2x1x7x128xf32> to vector<2x7x128xf32>
    %91 = arith.addf %88, %90 : vector<2x7x128xf32>
    %92 = vector.extract_strided_slice %3 {offsets = [0, 1, 1, 896], sizes = [2, 1, 7, 128], strides = [1, 1, 1, 1]} : vector<2x4x8x1280xf32> to vector<2x1x7x128xf32>
    %93 = vector.shape_cast %92 : vector<2x1x7x128xf32> to vector<2x7x128xf32>
    %94 = arith.addf %91, %93 : vector<2x7x128xf32>
    %95 = vector.extract_strided_slice %3 {offsets = [0, 2, 1, 1152], sizes = [2, 1, 7, 128], strides = [1, 1, 1, 1]} : vector<2x4x8x1280xf32> to vector<2x1x7x128xf32>
    %96 = vector.shape_cast %95 : vector<2x1x7x128xf32> to vector<2x7x128xf32>
    %97 = arith.addf %94, %96 : vector<2x7x128xf32>
    %98 = arith.maximumf %83, %97 : vector<2x7x128xf32>
    %99 = vector.extract_strided_slice %3 {offsets = [0, 3, 0, 0], sizes = [2, 1, 7, 128], strides = [1, 1, 1, 1]} : vector<2x4x8x1280xf32> to vector<2x1x7x128xf32>
    %100 = vector.shape_cast %99 : vector<2x1x7x128xf32> to vector<2x7x128xf32>
    %101 = vector.extract_strided_slice %3 {offsets = [0, 0, 1, 256], sizes = [2, 1, 7, 128], strides = [1, 1, 1, 1]} : vector<2x4x8x1280xf32> to vector<2x1x7x128xf32>
    %102 = vector.shape_cast %101 : vector<2x1x7x128xf32> to vector<2x7x128xf32>
    %103 = arith.addf %100, %102 : vector<2x7x128xf32>
    %104 = vector.extract_strided_slice %3 {offsets = [0, 1, 1, 512], sizes = [2, 1, 7, 128], strides = [1, 1, 1, 1]} : vector<2x4x8x1280xf32> to vector<2x1x7x128xf32>
    %105 = vector.shape_cast %104 : vector<2x1x7x128xf32> to vector<2x7x128xf32>
    %106 = arith.addf %103, %105 : vector<2x7x128xf32>
    %107 = vector.extract_strided_slice %3 {offsets = [0, 2, 1, 768], sizes = [2, 1, 7, 128], strides = [1, 1, 1, 1]} : vector<2x4x8x1280xf32> to vector<2x1x7x128xf32>
    %108 = vector.shape_cast %107 : vector<2x1x7x128xf32> to vector<2x7x128xf32>
    %109 = arith.addf %106, %108 : vector<2x7x128xf32>
    %110 = vector.extract_strided_slice %3 {offsets = [0, 3, 1, 1024], sizes = [2, 1, 7, 128], strides = [1, 1, 1, 1]} : vector<2x4x8x1280xf32> to vector<2x1x7x128xf32>
    %111 = vector.shape_cast %110 : vector<2x1x7x128xf32> to vector<2x7x128xf32>
    %112 = arith.addf %109, %111 : vector<2x7x128xf32>
    %113 = arith.maximumf %98, %112 : vector<2x7x128xf32>
    %114 = vector.extract_strided_slice %3 {offsets = [0, 3, 0, 128], sizes = [2, 1, 7, 128], strides = [1, 1, 1, 1]} : vector<2x4x8x1280xf32> to vector<2x1x7x128xf32>
    %115 = vector.shape_cast %114 : vector<2x1x7x128xf32> to vector<2x7x128xf32>
    %116 = vector.extract_strided_slice %3 {offsets = [0, 0, 1, 384], sizes = [2, 1, 7, 128], strides = [1, 1, 1, 1]} : vector<2x4x8x1280xf32> to vector<2x1x7x128xf32>
    %117 = vector.shape_cast %116 : vector<2x1x7x128xf32> to vector<2x7x128xf32>
    %118 = arith.addf %115, %117 : vector<2x7x128xf32>
    %119 = vector.extract_strided_slice %3 {offsets = [0, 1, 1, 640], sizes = [2, 1, 7, 128], strides = [1, 1, 1, 1]} : vector<2x4x8x1280xf32> to vector<2x1x7x128xf32>
    %120 = vector.shape_cast %119 : vector<2x1x7x128xf32> to vector<2x7x128xf32>
    %121 = arith.addf %118, %120 : vector<2x7x128xf32>
    %122 = vector.extract_strided_slice %3 {offsets = [0, 2, 1, 896], sizes = [2, 1, 7, 128], strides = [1, 1, 1, 1]} : vector<2x4x8x1280xf32> to vector<2x1x7x128xf32>
    %123 = vector.shape_cast %122 : vector<2x1x7x128xf32> to vector<2x7x128xf32>
    %124 = arith.addf %121, %123 : vector<2x7x128xf32>
    %125 = vector.extract_strided_slice %3 {offsets = [0, 3, 1, 1152], sizes = [2, 1, 7, 128], strides = [1, 1, 1, 1]} : vector<2x4x8x1280xf32> to vector<2x1x7x128xf32>
    %126 = vector.shape_cast %125 : vector<2x1x7x128xf32> to vector<2x7x128xf32>
    %127 = arith.addf %124, %126 : vector<2x7x128xf32>
    %128 = arith.maximumf %113, %127 : vector<2x7x128xf32>
    %c0_7 = arith.constant 0 : index
    %c0_8 = arith.constant 0 : index
    %129 = vector.load %arg3[%c0_7, %c0_8] : memref<1x128xf32, #tpu.memory_space<vmem>>, vector<1x128xf32>
    %130 = vector.shape_cast %129 : vector<1x128xf32> to vector<1x1x128xf32>
    %131 = vector.broadcast %130 : vector<1x1x128xf32> to vector<2x7x128xf32>
    %132 = arith.addf %128, %131 : vector<2x7x128xf32>
    %cst_9 = arith.constant 0.000000e+00 : f32
    %133 = vector.broadcast %cst_9 : f32 to vector<2x7x128xf32>
    %134 = arith.maximumf %132, %133 : vector<2x7x128xf32>
    %cst_10 = arith.constant 0.000000e+00 : f32
    %135 = vector.broadcast %cst_10 : f32 to vector<2x1x128xf32>
    %136 = tpu.concatenate %68, %69, %134, %135 in 1 : vector<2x7x128xf32>, vector<2x1x128xf32>, vector<2x7x128xf32>, vector<2x1x128xf32> -> vector<2x16x128xf32>
    %137 = vector.shape_cast %136 : vector<2x16x128xf32> to vector<32x128xf32>
    %138 = arith.truncf %137 : vector<32x128xf32> to vector<32x128xbf16>
    %c0_11 = arith.constant 0 : index
    %c0_12 = arith.constant 0 : index
    %139 = vector.load %arg4[%c0_11, %c0_12] : memref<128x1280xbf16, #tpu.memory_space<vmem>>, vector<128x1280xbf16>
    %cst_13 = arith.constant dense<0.000000e+00> : vector<32x1280xf32>
    %140 = tpu.matmul %138, %139, %cst_13 {dimension_numbers = #tpu.dot_dimension_numbers<[1], [0], [0], [1], [0, 0, 1, 1], [], []>} : vector<32x128xbf16>, vector<128x1280xbf16>, vector<32x1280xf32> -> vector<32x1280xf32>
    %141 = vector.shape_cast %140 : vector<32x1280xf32> to vector<2x2x8x1280xf32>
    %142 = vector.extract_strided_slice %141 {offsets = [0, 0, 0, 0], sizes = [2, 1, 5, 128], strides = [1, 1, 1, 1]} : vector<2x2x8x1280xf32> to vector<2x1x5x128xf32>
    %143 = vector.shape_cast %142 : vector<2x1x5x128xf32> to vector<2x5x128xf32>
    %144 = vector.extract_strided_slice %141 {offsets = [0, 1, 0, 256], sizes = [2, 1, 5, 128], strides = [1, 1, 1, 1]} : vector<2x2x8x1280xf32> to vector<2x1x5x128xf32>
    %145 = vector.shape_cast %144 : vector<2x1x5x128xf32> to vector<2x5x128xf32>
    %146 = arith.addf %143, %145 : vector<2x5x128xf32>
    %147 = vector.extract_strided_slice %141 {offsets = [0, 0, 1, 512], sizes = [2, 1, 5, 128], strides = [1, 1, 1, 1]} : vector<2x2x8x1280xf32> to vector<2x1x5x128xf32>
    %148 = vector.shape_cast %147 : vector<2x1x5x128xf32> to vector<2x5x128xf32>
    %149 = arith.addf %146, %148 : vector<2x5x128xf32>
    %150 = vector.extract_strided_slice %141 {offsets = [0, 1, 1, 768], sizes = [2, 1, 5, 128], strides = [1, 1, 1, 1]} : vector<2x2x8x1280xf32> to vector<2x1x5x128xf32>
    %151 = vector.shape_cast %150 : vector<2x1x5x128xf32> to vector<2x5x128xf32>
    %152 = arith.addf %149, %151 : vector<2x5x128xf32>
    %153 = vector.extract_strided_slice %141 {offsets = [0, 0, 2, 1024], sizes = [2, 1, 5, 128], strides = [1, 1, 1, 1]} : vector<2x2x8x1280xf32> to vector<2x1x5x128xf32>
    %154 = vector.shape_cast %153 : vector<2x1x5x128xf32> to vector<2x5x128xf32>
    %155 = arith.addf %152, %154 : vector<2x5x128xf32>
    %156 = vector.extract_strided_slice %141 {offsets = [0, 0, 0, 128], sizes = [2, 1, 5, 128], strides = [1, 1, 1, 1]} : vector<2x2x8x1280xf32> to vector<2x1x5x128xf32>
    %157 = vector.shape_cast %156 : vector<2x1x5x128xf32> to vector<2x5x128xf32>
    %158 = vector.extract_strided_slice %141 {offsets = [0, 1, 0, 384], sizes = [2, 1, 5, 128], strides = [1, 1, 1, 1]} : vector<2x2x8x1280xf32> to vector<2x1x5x128xf32>
    %159 = vector.shape_cast %158 : vector<2x1x5x128xf32> to vector<2x5x128xf32>
    %160 = arith.addf %157, %159 : vector<2x5x128xf32>
    %161 = vector.extract_strided_slice %141 {offsets = [0, 0, 1, 640], sizes = [2, 1, 5, 128], strides = [1, 1, 1, 1]} : vector<2x2x8x1280xf32> to vector<2x1x5x128xf32>
    %162 = vector.shape_cast %161 : vector<2x1x5x128xf32> to vector<2x5x128xf32>
    %163 = arith.addf %160, %162 : vector<2x5x128xf32>
    %164 = vector.extract_strided_slice %141 {offsets = [0, 1, 1, 896], sizes = [2, 1, 5, 128], strides = [1, 1, 1, 1]} : vector<2x2x8x1280xf32> to vector<2x1x5x128xf32>
    %165 = vector.shape_cast %164 : vector<2x1x5x128xf32> to vector<2x5x128xf32>
    %166 = arith.addf %163, %165 : vector<2x5x128xf32>
    %167 = vector.extract_strided_slice %141 {offsets = [0, 0, 2, 1152], sizes = [2, 1, 5, 128], strides = [1, 1, 1, 1]} : vector<2x2x8x1280xf32> to vector<2x1x5x128xf32>
    %168 = vector.shape_cast %167 : vector<2x1x5x128xf32> to vector<2x5x128xf32>
    %169 = arith.addf %166, %168 : vector<2x5x128xf32>
    %170 = arith.maximumf %155, %169 : vector<2x5x128xf32>
    %171 = vector.extract_strided_slice %141 {offsets = [0, 1, 0, 0], sizes = [2, 1, 5, 128], strides = [1, 1, 1, 1]} : vector<2x2x8x1280xf32> to vector<2x1x5x128xf32>
    %172 = vector.shape_cast %171 : vector<2x1x5x128xf32> to vector<2x5x128xf32>
    %173 = vector.extract_strided_slice %141 {offsets = [0, 0, 1, 256], sizes = [2, 1, 5, 128], strides = [1, 1, 1, 1]} : vector<2x2x8x1280xf32> to vector<2x1x5x128xf32>
    %174 = vector.shape_cast %173 : vector<2x1x5x128xf32> to vector<2x5x128xf32>
    %175 = arith.addf %172, %174 : vector<2x5x128xf32>
    %176 = vector.extract_strided_slice %141 {offsets = [0, 1, 1, 512], sizes = [2, 1, 5, 128], strides = [1, 1, 1, 1]} : vector<2x2x8x1280xf32> to vector<2x1x5x128xf32>
    %177 = vector.shape_cast %176 : vector<2x1x5x128xf32> to vector<2x5x128xf32>
    %178 = arith.addf %175, %177 : vector<2x5x128xf32>
    %179 = vector.extract_strided_slice %141 {offsets = [0, 0, 2, 768], sizes = [2, 1, 5, 128], strides = [1, 1, 1, 1]} : vector<2x2x8x1280xf32> to vector<2x1x5x128xf32>
    %180 = vector.shape_cast %179 : vector<2x1x5x128xf32> to vector<2x5x128xf32>
    %181 = arith.addf %178, %180 : vector<2x5x128xf32>
    %182 = vector.extract_strided_slice %141 {offsets = [0, 1, 2, 1024], sizes = [2, 1, 5, 128], strides = [1, 1, 1, 1]} : vector<2x2x8x1280xf32> to vector<2x1x5x128xf32>
    %183 = vector.shape_cast %182 : vector<2x1x5x128xf32> to vector<2x5x128xf32>
    %184 = arith.addf %181, %183 : vector<2x5x128xf32>
    %185 = arith.maximumf %170, %184 : vector<2x5x128xf32>
    %186 = vector.extract_strided_slice %141 {offsets = [0, 1, 0, 128], sizes = [2, 1, 5, 128], strides = [1, 1, 1, 1]} : vector<2x2x8x1280xf32> to vector<2x1x5x128xf32>
    %187 = vector.shape_cast %186 : vector<2x1x5x128xf32> to vector<2x5x128xf32>
    %188 = vector.extract_strided_slice %141 {offsets = [0, 0, 1, 384], sizes = [2, 1, 5, 128], strides = [1, 1, 1, 1]} : vector<2x2x8x1280xf32> to vector<2x1x5x128xf32>
    %189 = vector.shape_cast %188 : vector<2x1x5x128xf32> to vector<2x5x128xf32>
    %190 = arith.addf %187, %189 : vector<2x5x128xf32>
    %191 = vector.extract_strided_slice %141 {offsets = [0, 1, 1, 640], sizes = [2, 1, 5, 128], strides = [1, 1, 1, 1]} : vector<2x2x8x1280xf32> to vector<2x1x5x128xf32>
    %192 = vector.shape_cast %191 : vector<2x1x5x128xf32> to vector<2x5x128xf32>
    %193 = arith.addf %190, %192 : vector<2x5x128xf32>
    %194 = vector.extract_strided_slice %141 {offsets = [0, 0, 2, 896], sizes = [2, 1, 5, 128], strides = [1, 1, 1, 1]} : vector<2x2x8x1280xf32> to vector<2x1x5x128xf32>
    %195 = vector.shape_cast %194 : vector<2x1x5x128xf32> to vector<2x5x128xf32>
    %196 = arith.addf %193, %195 : vector<2x5x128xf32>
    %197 = vector.extract_strided_slice %141 {offsets = [0, 1, 2, 1152], sizes = [2, 1, 5, 128], strides = [1, 1, 1, 1]} : vector<2x2x8x1280xf32> to vector<2x1x5x128xf32>
    %198 = vector.shape_cast %197 : vector<2x1x5x128xf32> to vector<2x5x128xf32>
    %199 = arith.addf %196, %198 : vector<2x5x128xf32>
    %200 = arith.maximumf %185, %199 : vector<2x5x128xf32>
    %c0_14 = arith.constant 0 : index
    %c0_15 = arith.constant 0 : index
    %201 = vector.load %arg5[%c0_14, %c0_15] : memref<1x128xf32, #tpu.memory_space<vmem>>, vector<1x128xf32>
    %202 = vector.shape_cast %201 : vector<1x128xf32> to vector<1x1x128xf32>
    %203 = vector.broadcast %202 : vector<1x1x128xf32> to vector<2x5x128xf32>
    %204 = arith.addf %200, %203 : vector<2x5x128xf32>
    %cst_16 = arith.constant 0.000000e+00 : f32
    %205 = vector.broadcast %cst_16 : f32 to vector<2x5x128xf32>
    %206 = arith.maximumf %204, %205 : vector<2x5x128xf32>
    %207 = arith.truncf %206 : vector<2x5x128xf32> to vector<2x5x128xbf16>
    %208 = vector.extract_strided_slice %207 {offsets = [0, 0, 0], sizes = [2, 1, 128], strides = [1, 1, 1]} : vector<2x5x128xbf16> to vector<2x1x128xbf16>
    %209 = vector.shape_cast %208 : vector<2x1x128xbf16> to vector<2x128xbf16>
    %c0_17 = arith.constant 0 : index
    %c0_18 = arith.constant 0 : index
    %c0_19 = arith.constant 0 : index
    %210 = vector.load %arg6[%c0_17, %c0_18, %c0_19] : memref<5x128x128xbf16, #tpu.memory_space<vmem>>, vector<1x128x128xbf16>
    %211 = vector.shape_cast %210 : vector<1x128x128xbf16> to vector<128x128xbf16>
    %cst_20 = arith.constant dense<0.000000e+00> : vector<2x128xf32>
    %212 = tpu.matmul %209, %211, %cst_20 {dimension_numbers = #tpu.dot_dimension_numbers<[1], [0], [0], [1], [0, 0, 1, 1], [], []>} : vector<2x128xbf16>, vector<128x128xbf16>, vector<2x128xf32> -> vector<2x128xf32>
    %213 = vector.extract_strided_slice %207 {offsets = [0, 1, 0], sizes = [2, 1, 128], strides = [1, 1, 1]} : vector<2x5x128xbf16> to vector<2x1x128xbf16>
    %214 = vector.shape_cast %213 : vector<2x1x128xbf16> to vector<2x128xbf16>
    %c1 = arith.constant 1 : index
    %c0_21 = arith.constant 0 : index
    %c0_22 = arith.constant 0 : index
    %215 = vector.load %arg6[%c1, %c0_21, %c0_22] : memref<5x128x128xbf16, #tpu.memory_space<vmem>>, vector<1x128x128xbf16>
    %216 = vector.shape_cast %215 : vector<1x128x128xbf16> to vector<128x128xbf16>
    %cst_23 = arith.constant dense<0.000000e+00> : vector<2x128xf32>
    %217 = tpu.matmul %214, %216, %cst_23 {dimension_numbers = #tpu.dot_dimension_numbers<[1], [0], [0], [1], [0, 0, 1, 1], [], []>} : vector<2x128xbf16>, vector<128x128xbf16>, vector<2x128xf32> -> vector<2x128xf32>
    %218 = arith.addf %212, %217 : vector<2x128xf32>
    %219 = vector.extract_strided_slice %207 {offsets = [0, 2, 0], sizes = [2, 1, 128], strides = [1, 1, 1]} : vector<2x5x128xbf16> to vector<2x1x128xbf16>
    %220 = vector.shape_cast %219 : vector<2x1x128xbf16> to vector<2x128xbf16>
    %c2 = arith.constant 2 : index
    %c0_24 = arith.constant 0 : index
    %c0_25 = arith.constant 0 : index
    %221 = vector.load %arg6[%c2, %c0_24, %c0_25] : memref<5x128x128xbf16, #tpu.memory_space<vmem>>, vector<1x128x128xbf16>
    %222 = vector.shape_cast %221 : vector<1x128x128xbf16> to vector<128x128xbf16>
    %cst_26 = arith.constant dense<0.000000e+00> : vector<2x128xf32>
    %223 = tpu.matmul %220, %222, %cst_26 {dimension_numbers = #tpu.dot_dimension_numbers<[1], [0], [0], [1], [0, 0, 1, 1], [], []>} : vector<2x128xbf16>, vector<128x128xbf16>, vector<2x128xf32> -> vector<2x128xf32>
    %224 = arith.addf %218, %223 : vector<2x128xf32>
    %225 = vector.extract_strided_slice %207 {offsets = [0, 3, 0], sizes = [2, 1, 128], strides = [1, 1, 1]} : vector<2x5x128xbf16> to vector<2x1x128xbf16>
    %226 = vector.shape_cast %225 : vector<2x1x128xbf16> to vector<2x128xbf16>
    %c3 = arith.constant 3 : index
    %c0_27 = arith.constant 0 : index
    %c0_28 = arith.constant 0 : index
    %227 = vector.load %arg6[%c3, %c0_27, %c0_28] : memref<5x128x128xbf16, #tpu.memory_space<vmem>>, vector<1x128x128xbf16>
    %228 = vector.shape_cast %227 : vector<1x128x128xbf16> to vector<128x128xbf16>
    %cst_29 = arith.constant dense<0.000000e+00> : vector<2x128xf32>
    %229 = tpu.matmul %226, %228, %cst_29 {dimension_numbers = #tpu.dot_dimension_numbers<[1], [0], [0], [1], [0, 0, 1, 1], [], []>} : vector<2x128xbf16>, vector<128x128xbf16>, vector<2x128xf32> -> vector<2x128xf32>
    %230 = arith.addf %224, %229 : vector<2x128xf32>
    %231 = vector.extract_strided_slice %207 {offsets = [0, 4, 0], sizes = [2, 1, 128], strides = [1, 1, 1]} : vector<2x5x128xbf16> to vector<2x1x128xbf16>
    %232 = vector.shape_cast %231 : vector<2x1x128xbf16> to vector<2x128xbf16>
    %c4 = arith.constant 4 : index
    %c0_30 = arith.constant 0 : index
    %c0_31 = arith.constant 0 : index
    %233 = vector.load %arg6[%c4, %c0_30, %c0_31] : memref<5x128x128xbf16, #tpu.memory_space<vmem>>, vector<1x128x128xbf16>
    %234 = vector.shape_cast %233 : vector<1x128x128xbf16> to vector<128x128xbf16>
    %cst_32 = arith.constant dense<0.000000e+00> : vector<2x128xf32>
    %235 = tpu.matmul %232, %234, %cst_32 {dimension_numbers = #tpu.dot_dimension_numbers<[1], [0], [0], [1], [0, 0, 1, 1], [], []>} : vector<2x128xbf16>, vector<128x128xbf16>, vector<2x128xf32> -> vector<2x128xf32>
    %236 = arith.addf %230, %235 : vector<2x128xf32>
    %c0_33 = arith.constant 0 : index
    %c0_34 = arith.constant 0 : index
    %237 = vector.load %arg7[%c0_33, %c0_34] : memref<1x128xf32, #tpu.memory_space<vmem>>, vector<1x128xf32>
    %238 = vector.broadcast %237 : vector<1x128xf32> to vector<2x128xf32>
    %239 = arith.addf %236, %238 : vector<2x128xf32>
    %cst_35 = arith.constant 0.000000e+00 : f32
    %240 = vector.broadcast %cst_35 : f32 to vector<2x128xf32>
    %241 = arith.maximumf %239, %240 : vector<2x128xf32>
    %242 = arith.truncf %241 : vector<2x128xf32> to vector<2x128xbf16>
    %c0_36 = arith.constant 0 : index
    %c0_37 = arith.constant 0 : index
    %243 = vector.load %arg8[%c0_36, %c0_37] : memref<128x128xbf16, #tpu.memory_space<vmem>>, vector<128x128xbf16>
    %cst_38 = arith.constant dense<0.000000e+00> : vector<2x128xf32>
    %244 = tpu.matmul %242, %243, %cst_38 {dimension_numbers = #tpu.dot_dimension_numbers<[1], [0], [0], [1], [0, 0, 1, 1], [], []>} : vector<2x128xbf16>, vector<128x128xbf16>, vector<2x128xf32> -> vector<2x128xf32>
    %c0_39 = arith.constant 0 : index
    %c0_40 = arith.constant 0 : index
    %245 = vector.load %arg9[%c0_39, %c0_40] : memref<1x128xf32, #tpu.memory_space<vmem>>, vector<1x128xf32>
    %246 = vector.broadcast %245 : vector<1x128xf32> to vector<2x128xf32>
    %247 = arith.addf %244, %246 : vector<2x128xf32>
    %cst_41 = arith.constant 0.000000e+00 : f32
    %248 = vector.broadcast %cst_41 : f32 to vector<2x128xf32>
    %249 = arith.maximumf %247, %248 : vector<2x128xf32>
    %250 = arith.truncf %249 : vector<2x128xf32> to vector<2x128xbf16>
    %c0_42 = arith.constant 0 : index
    %c0_43 = arith.constant 0 : index
    %251 = vector.load %arg10[%c0_42, %c0_43] : memref<128x128xbf16, #tpu.memory_space<vmem>>, vector<128x128xbf16>
    %cst_44 = arith.constant dense<0.000000e+00> : vector<2x128xf32>
    %252 = tpu.matmul %250, %251, %cst_44 {dimension_numbers = #tpu.dot_dimension_numbers<[1], [0], [0], [1], [0, 0, 1, 1], [], []>} : vector<2x128xbf16>, vector<128x128xbf16>, vector<2x128xf32> -> vector<2x128xf32>
    %c0_45 = arith.constant 0 : index
    %c0_46 = arith.constant 0 : index
    %253 = vector.load %arg11[%c0_45, %c0_46] : memref<1x128xf32, #tpu.memory_space<vmem>>, vector<1x128xf32>
    %254 = vector.broadcast %253 : vector<1x128xf32> to vector<2x128xf32>
    %255 = arith.addf %252, %254 : vector<2x128xf32>
    %c0_47 = arith.constant 0 : index
    %c0_48 = arith.constant 0 : index
    %256 = vector.load %arg12[%c0_47, %c0_48] : memref<2x128xf32, #tpu.memory_space<vmem>>, vector<2x128xf32>
    tpu.vector_store %arg12[%c0_47, %c0_48], %255 {strides = array<i32>} : memref<2x128xf32, #tpu.memory_space<vmem>>, vector<2x128xf32>,
    return
  }
  func.func @transform_0(%arg0: i32) -> (i32, i32) {
    %c0_i32 = arith.constant 0 : i32
    %c0_i32_0 = arith.constant 0 : i32
    return %arg0, %c0_i32 : i32, i32
  }
  func.func @transform_1(%arg0: i32) -> (i32, i32) {
    %c0_i32 = arith.constant 0 : i32
    %c0_i32_0 = arith.constant 0 : i32
    %c0_i32_1 = arith.constant 0 : i32
    return %c0_i32, %c0_i32_0 : i32, i32
  }
  func.func @transform_2(%arg0: i32) -> (i32, i32) {
    %c0_i32 = arith.constant 0 : i32
    %c0_i32_0 = arith.constant 0 : i32
    %c0_i32_1 = arith.constant 0 : i32
    return %c0_i32, %c0_i32_0 : i32, i32
  }
  func.func @transform_3(%arg0: i32) -> (i32, i32) {
    %c0_i32 = arith.constant 0 : i32
    %c0_i32_0 = arith.constant 0 : i32
    %c0_i32_1 = arith.constant 0 : i32
    return %c0_i32, %c0_i32_0 : i32, i32
  }
  func.func @transform_4(%arg0: i32) -> (i32, i32) {
    %c0_i32 = arith.constant 0 : i32
    %c0_i32_0 = arith.constant 0 : i32
    %c0_i32_1 = arith.constant 0 : i32
    return %c0_i32, %c0_i32_0 : i32, i32
  }
  func.func @transform_5(%arg0: i32) -> (i32, i32, i32) {
    %c0_i32 = arith.constant 0 : i32
    %c0_i32_0 = arith.constant 0 : i32
    %c0_i32_1 = arith.constant 0 : i32
    %c0_i32_2 = arith.constant 0 : i32
    return %c0_i32, %c0_i32_0, %c0_i32_1 : i32, i32, i32
  }
  func.func @transform_6(%arg0: i32) -> (i32, i32) {
    %c0_i32 = arith.constant 0 : i32
    %c0_i32_0 = arith.constant 0 : i32
    %c0_i32_1 = arith.constant 0 : i32
    return %c0_i32, %c0_i32_0 : i32, i32
  }
  func.func @transform_7(%arg0: i32) -> (i32, i32) {
    %c0_i32 = arith.constant 0 : i32
    %c0_i32_0 = arith.constant 0 : i32
    %c0_i32_1 = arith.constant 0 : i32
    return %c0_i32, %c0_i32_0 : i32, i32
  }
  func.func @transform_8(%arg0: i32) -> (i32, i32) {
    %c0_i32 = arith.constant 0 : i32
    %c0_i32_0 = arith.constant 0 : i32
    %c0_i32_1 = arith.constant 0 : i32
    return %c0_i32, %c0_i32_0 : i32, i32
  }
  func.func @transform_9(%arg0: i32) -> (i32, i32) {
    %c0_i32 = arith.constant 0 : i32
    %c0_i32_0 = arith.constant 0 : i32
    %c0_i32_1 = arith.constant 0 : i32
    return %c0_i32, %c0_i32_0 : i32, i32
  }
  func.func @transform_10(%arg0: i32) -> (i32, i32) {
    %c0_i32 = arith.constant 0 : i32
    %c0_i32_0 = arith.constant 0 : i32
    %c0_i32_1 = arith.constant 0 : i32
    return %c0_i32, %c0_i32_0 : i32, i32
  }
  func.func @transform_11(%arg0: i32) -> (i32, i32) {
    %c0_i32 = arith.constant 0 : i32
    %c0_i32_0 = arith.constant 0 : i32
    return %arg0, %c0_i32 : i32, i32
  }
}

</mosaic_0001>

<bundles_post_ra>
// kernel: _lambda_.1
= control target key start
LH: loop header
LB: loop body
LE: loop exit
PB: predicated region body
PF: predicated region fallthrough
CT: control target
= control target key end

     0   :  { %16 = vsyncpa [#allocation3], 0  ;;  %s3908_s0 = inlined_call_operand.vmem [shape: bf16[64,32], index: 0, kind: input, shape index: {}]   ;;  %s3909_s1 = inlined_call_operand.hbm [shape: bf16[32,1280], index: 1, kind: input, shape index: {}]   ;;  %s3910_s2 = inlined_call_operand.vmem [shape: f32[1,128], index: 2, kind: input, shape index: {}]   ;;  %s3911_s3 = inlined_call_operand.hbm [shape: bf16[128,1280], index: 3, kind: input, shape index: {}]   ;;  %s3912_s4 = inlined_call_operand.vmem [shape: f32[1,128], index: 4, kind: input, shape index: {}]   ;;  %s3913_s5 = inlined_call_operand.vmem [shape: bf16[5,128,128], index: 5, kind: input, shape index: {}]   ;;  %s3914_s6 = inlined_call_operand.vmem [shape: f32[1,128], index: 6, kind: input, shape index: {}]   ;;  %s3915_s7 = inlined_call_operand.hbm [shape: bf16[128,128], index: 7, kind: input, shape index: {}]   ;;  %s3916_s8 = inlined_call_operand.vmem [shape: f32[1,128], index: 8, kind: input, shape index: {}]   ;;  %s3917_s9 = inlined_call_operand.hbm [shape: bf16[128,128], index: 9, kind: input, shape index: {}]   ;;  %s3918_s10 = inlined_call_operand.vmem [shape: f32[1,128], index: 10, kind: input, shape index: {}]   ;;  %s3919_s11 = inlined_call_operand.hbm [shape: f32[2,128], index: 11, kind: output, shape index: {}]  }
   0x1   :  { %17 = vsyncpa [#allocation6], 0 }
   0x2   :  { %18 = vsyncpa [#allocation9], 0 }
   0x3   :  { %19 = vsyncpa [#allocation4], 0  ;;  %s3342_s17 = smov [#allocation5]   ;;  %s3343_s19 = smov [#allocation2]  }
   0x4   :  { %s41_s18 = sshll.u32 %s3342_s17, 4  ;;  %s27_s20 = sshll.u32 %s3343_s19, 4  ;;  %s42_s18 = int_to_ptr.vmem [resolvable:$true] %s41_s18  ;;  %s28_s20 = int_to_ptr.vmem [resolvable:$true] %s27_s20 }
   0x5   :  { %s3242_s21 = scalar_lea.vmem %s42_s18, 10240  ;;  %p3247_p1 = scmp.lt.s32.totalorder %s42_s18, %s42_s18 }
   0x6   :  { %p3243_p0 = scmp.ne.s32.totalorder %s42_s18, %s3242_s21  ;;  %p3248_p2 = scmp.lt.s32.totalorder %s3242_s21, %s3242_s21 }
   0x8   :  { %p3249_p3 = por %p3248_p2, %p3247_p1 }
   0xa   :  { %p3250_p4 = pnand %p3249_p3, %p3243_p0 }
   0xc   :  { %3253 = shalt.err (!%p3250_p4)
}
   0xd   :  { %s3344_s22 = smov 640   ;;  %s3345_s23 = smov 40  }
   0xe   :  { %47 = dma.hbm_to_vmem [thread:$0]  %s3911_s3, 10240, %s42_s18, [#allocation6], %s3344_s22, %s3344_s22, %s3345_s23  }
   0xf   :  { %s3262_s26 = scalar_lea.vmem %s28_s20, 2560  ;;  %p3267_p6 = scmp.lt.s32.totalorder %s28_s20, %s28_s20 }
  0x10   :  { %p3263_p5 = scmp.ne.s32.totalorder %s28_s20, %s3262_s26  ;;  %p3268_p7 = scmp.lt.s32.totalorder %s3262_s26, %s3262_s26 }
  0x12   :  { %p3269_p8 = por %p3268_p7, %p3267_p6 }
  0x14   :  { %p3270_p9 = pnand %p3269_p8, %p3263_p5 }
  0x16   :  { %3273 = shalt.err (!%p3270_p9)
}
  0x17   :  { %33 = dma.hbm_to_vmem [thread:$0]  %s3909_s1, 2560, %s28_s20, [#allocation3], %s3344_s22, %s3344_s22, %s3345_s23  }
  0x18   :  { %s3346_s29 = smov [#allocation7]  }
  0x19   :  { %s59_s30 = sshll.u32 %s3346_s29, 4  ;;  %s60_s30 = int_to_ptr.vmem [resolvable:$true] %s59_s30 }
  0x1a   :  { %s3282_s12 = scalar_lea.vmem %s60_s30, 1024  ;;  %p3287_p11 = scmp.lt.s32.totalorder %s60_s30, %s60_s30 }
  0x1b   :  { %p3283_p10 = scmp.ne.s32.totalorder %s60_s30, %s3282_s12  ;;  %p3288_p12 = scmp.lt.s32.totalorder %s3282_s12, %s3282_s12 }
  0x1d   :  { %p3289_p13 = por %p3288_p12, %p3287_p11 }
  0x1f   :  { %p3290_p0 = pnand %p3289_p13, %p3283_p10 }
  0x21   :  { %3293 = shalt.err (!%p3290_p0)
}
  0x22   :  { %s3347_s3 = smov 64   ;;  %s3348_s13 = smov 4  }
  0x23   :  { %65 = dma.hbm_to_vmem [thread:$0]  %s3915_s7, 1024, %s60_s30, [#allocation6], %s3347_s3, %s3347_s3, %s3348_s13  }
  0x24   :  { %s3349_s16 = smov [#allocation8]  }
  0x25   :  { %s73_s17 = sshll.u32 %s3349_s16, 4  ;;  %s74_s17 = int_to_ptr.vmem [resolvable:$true] %s73_s17 }
  0x26   :  { %s3302_s1 = scalar_lea.vmem %s74_s17, 1024  ;;  %p3307_p2 = scmp.lt.s32.totalorder %s74_s17, %s74_s17 }
  0x27   :  { %p3303_p1 = scmp.ne.s32.totalorder %s74_s17, %s3302_s1  ;;  %p3308_p3 = scmp.lt.s32.totalorder %s3302_s1, %s3302_s1 }
  0x29   :  { %p3309_p4 = por %p3308_p3, %p3307_p2 }
  0x2b   :  { %p3310_p5 = pnand %p3309_p4, %p3303_p1 }
  0x2d   :  { %3313 = shalt.err (!%p3310_p5)
}
  0x2e   :  { %79 = dma.hbm_to_vmem [thread:$0]  %s3917_s9, 1024, %s74_s17, [#allocation9], %s3347_s3, %s3347_s3, %s3348_s13  }
  0x2f   :  { %3334 = dma.done.wait [#allocation3], 2560  }
  0x30   :  { %3335 = vsyncadd [#allocation3], 4294964736 }
  0x31   :  { %3336 = dma.done.wait [#allocation6], 11264  }
  0x32   :  { %3337 = vsyncadd [#allocation6], 4294956032 }
  0x33   :  { %3338 = dma.done.wait [#allocation9], 1024  }
  0x34   :  { %3339 = vsyncadd [#allocation9], 4294966272  ;;  %v3920_v0 = vmov 0   ;;  %v3024_v1 = vld [vmem:[#allocation2 + $0x54] ss:$40 sps:$4 sm:$0xff]   ;;  %v3431_v5 = vld [vmem:[%s3908_s0] sm:$0xff]  }
  0x35   :  { %288 = vmatprep.mubr.bf16.mxu0 %v3920_v0  ;;  %308 = vmatprep.mubr.bf16.mxu1 %v3920_v0  ;;  %v3026_v2 = vld [vmem:[#allocation2 + $0x50] ss:$40 sps:$4 sm:$0xff]   ;;  %v3027_v3 = vld [vmem:[#allocation2 + $0x4] ss:$40 sps:$4 sm:$0xff]   ;;  %v3029_v4 = vld [vmem:[#allocation2] ss:$40 sps:$4 sm:$0xff]  }
  0x36   :  { %268 = vmatprep.subr.bf16.mxu0 %v3024_v1  ;;  %3008 = vmatprep.subr.bf16.mxu1 %v3024_v1  ;;  %v3436_v6 = vld [vmem:[%s3908_s0 + $0x10] sm:$0xff]   ;;  %v3032_v7 = vld [vmem:[#allocation2 + $0x58] ss:$40 sps:$4 sm:$0xff]   ;;  %v3034_v8 = vld [vmem:[#allocation2 + $0x5c] ss:$40 sps:$4 sm:$0xff]   ;;  %vm243_vm0 = vcmask 261120  }
  0x37   :  { %269 = vmatpush1.bf16.msra.mxu0 %v3026_v2  ;;  %3010 = vmatpush1.bf16.msra.mxu1 %v3026_v2  ;;  %v3035_v9 = vld [vmem:[#allocation2 + $0x60] ss:$40 sps:$4 sm:$0xff]   ;;  %v3037_v10 = vld [vmem:[#allocation2 + $0x64] ss:$40 sps:$4 sm:$0xff]   ;;  %v3043_v13 = vld [vmem:[#allocation2 + $0x10] ss:$40 sps:$4 sm:$0xff]  }
  0x38   :  { %270 = vmatprep.subr.bf16.mxu0 %v3027_v3  ;;  %3009 = vmatprep.subr.bf16.mxu1 %v3027_v3  ;;  %v3040_v11 = vld [vmem:[#allocation2 + $0x8] ss:$40 sps:$4 sm:$0xff]   ;;  %v3042_v12 = vld [vmem:[#allocation2 + $0xc] ss:$40 sps:$4 sm:$0xff]   ;;  %v3039_v17 = vld [vmem:[%s3908_s0 + $0x18] sm:$0xff]   ;;  %vm832_vm1 = vcmask 1046528  }
  0x39   :  { %v3045_v14 = vld [vmem:[#allocation2 + $0x14] ss:$40 sps:$4 sm:$0xff]   ;;  %v3038_v15 = vld [vmem:[%s3908_s0 + $0x8] sm:$0xff]   ;;  %v3049_v20 = vld [vmem:[#allocation2 + $0x70] ss:$40 sps:$4 sm:$0xff]   ;;  %vm3352_vm3 = vmmov 0  }
  0x3a   :  { %v3048_v16 = vld [vmem:[#allocation2 + $0x6c] ss:$40 sps:$4 sm:$0xff]   ;;  %v3046_v19 = vld [vmem:[#allocation2 + $0x68] ss:$40 sps:$4 sm:$0xff]   ;;  %v3054_v21 = vld [vmem:[#allocation2 + $0x1c] ss:$40 sps:$4 sm:$0xff]  }
  0x3b   :  { %271 = vmatpush1.bf16.msra.mxu0 %v3029_v4  ;;  %3011 = vmatpush1.bf16.msra.mxu1 %v3029_v4  ;;  %v3051_v18 = vld [vmem:[#allocation2 + $0x74] ss:$40 sps:$4 sm:$0xff]   ;;  %v3057_v22 = vld [vmem:[#allocation2 + $0x24] ss:$40 sps:$4 sm:$0xff]   ;;  %v3052_v23 = vld [vmem:[#allocation2 + $0x18] ss:$40 sps:$4 sm:$0xff]  }
  0x3c   :  { %341 = vmatprep.subr.bf16.mxu1 %v3034_v8  ;;  %414 = vmatprep.subr.bf16.mxu0 %v3037_v10  ;;  %v3055_v24 = vld [vmem:[#allocation2 + $0x20] ss:$40 sps:$4 sm:$0xff]   ;;  %v3060_v25 = vld [vmem:[#allocation5 + $0x234] ss:$40 sps:$4 sm:$0xff]   ;;  %v3058_v27 = vld [vmem:[#allocation5 + $0x230] ss:$40 sps:$4 sm:$0xff]  }
  0x3d   :  { %v3063_v26 = vld [vmem:[#allocation5 + $0x23c] ss:$40 sps:$4 sm:$0xff]   ;;  %v3061_v28 = vld [vmem:[#allocation5 + $0x238] ss:$40 sps:$4 sm:$0xff]   ;;  %v3069_v30 = vld [vmem:[#allocation5 + $0x1ec] ss:$40 sps:$4 sm:$0xff]  }
  0x3e   :  { %2550 = vmatmul.mubr.msk.bf16.vlgmr.msra.gmra.mxu0 %vm243_vm0, %v3431_v5  ;;  %2552 = vmatmul.mubr.msk.bf16.vlgmr.msra.gmra.mxu1 %vm243_vm0, %v3436_v6  ;;  %v3066_v29 = vld [vmem:[#allocation5 + $0x1e4] ss:$40 sps:$4 sm:$0xff]   ;;  %v3064_v31 = vld [vmem:[#allocation5 + $0x1e0] ss:$40 sps:$4 sm:$0xff]   ;;  %v3072_v33 = vld [vmem:[#allocation5 + $0x194] ss:$40 sps:$4 sm:$0xff]  }
  0x3f   :  { %342 = vmatpush1.bf16.msra.mxu1 %v3032_v7  ;;  %415 = vmatpush1.bf16.msra.mxu0 %v3035_v9  ;;  %v3067_v32 = vld [vmem:[#allocation5 + $0x1e8] ss:$40 sps:$4 sm:$0xff]   ;;  %v3075_v34 = vld [vmem:[#allocation5 + $0x19c] ss:$40 sps:$4 sm:$0xff]   ;;  %v3073_v36 = vld [vmem:[#allocation5 + $0x198] ss:$40 sps:$4 sm:$0xff]  }
  0x40   :  { %298 = vmatprep.mubr.bf16.mxu0 %v3920_v0  ;;  %318 = vmatprep.mubr.bf16.mxu1 %v3920_v0  ;;  %v3070_v35 = vld [vmem:[#allocation5 + $0x190] ss:$40 sps:$4 sm:$0xff]   ;;  %v3078_v37 = vld [vmem:[#allocation5 + $0x144] ss:$40 sps:$4 sm:$0xff]   ;;  %v3076_v39 = vld [vmem:[#allocation5 + $0x140] ss:$40 sps:$4 sm:$0xff]  }
  0x41   :  { %343 = vmatprep.subr.bf16.mxu1 %v3042_v12  ;;  %416 = vmatprep.subr.bf16.mxu0 %v3045_v14  ;;  %v3081_v38 = vld [vmem:[#allocation5 + $0x14c] ss:$40 sps:$4 sm:$0xff]   ;;  %v3079_v40 = vld [vmem:[#allocation5 + $0x148] ss:$40 sps:$4 sm:$0xff]   ;;  %v3087_v42 = vld [vmem:[#allocation5 + $0xfc] ss:$40 sps:$4 sm:$0xff]  }
  0x42   :  { %v3084_v41 = vld [vmem:[#allocation5 + $0xf4] ss:$40 sps:$4 sm:$0xff]   ;;  %v3082_v43 = vld [vmem:[#allocation5 + $0xf0] ss:$40 sps:$4 sm:$0xff]   ;;  %v3090_v45 = vld [vmem:[#allocation5 + $0xa4] ss:$40 sps:$4 sm:$0xff]  }
  0x43   :  { %344 = vmatpush1.bf16.msra.mxu1 %v3040_v11  ;;  %417 = vmatpush1.bf16.msra.mxu0 %v3043_v13  ;;  %v3085_v44 = vld [vmem:[#allocation5 + $0xf8] ss:$40 sps:$4 sm:$0xff]   ;;  %v3093_v46 = vld [vmem:[#allocation5 + $0xac] ss:$40 sps:$4 sm:$0xff]   ;;  %v3091_v48 = vld [vmem:[#allocation5 + $0xa8] ss:$40 sps:$4 sm:$0xff]  }
  0x44   :  { %487 = vmatprep.subr.bf16.mxu1 %v3048_v16  ;;  %560 = vmatprep.subr.bf16.mxu0 %v3051_v18  ;;  %v3088_v47 = vld [vmem:[#allocation5 + $0xa0] ss:$40 sps:$4 sm:$0xff]   ;;  %v3096_v49 = vld [vmem:[#allocation5 + $0x54] ss:$40 sps:$4 sm:$0xff]   ;;  %v3094_v51 = vld [vmem:[#allocation5 + $0x50] ss:$40 sps:$4 sm:$0xff]  }
  0x45   :  { %v3099_v50 = vld [vmem:[#allocation5 + $0x5c] ss:$40 sps:$4 sm:$0xff]   ;;  %v3097_v52 = vld [vmem:[#allocation5 + $0x58] ss:$40 sps:$4 sm:$0xff]   ;;  %v3105_v54 = vld [vmem:[#allocation5 + $0xc] ss:$40 sps:$4 sm:$0xff]  }
  0x46   :  { %2551 = vmatmul.mubr.msk.bf16.gmra.mxu0 %vm243_vm0, %v3038_v15  ;;  %2553 = vmatmul.mubr.msk.bf16.gmra.mxu1 %vm243_vm0, %v3039_v17  ;;  %v3102_v53 = vld [vmem:[#allocation5 + $0x4] ss:$40 sps:$4 sm:$0xff]   ;;  %v3100_v55 = vld [vmem:[#allocation5] ss:$40 sps:$4 sm:$0xff]   ;;  %vm3616_vm2 = vmpackc.low %vm832_vm1, %vm832_vm1  ;;  %vm1757_vm4 = vcmask 1041409  }
  0x47   :  { %361 = vmatprep.mubr.bf16.mxu1 %v3920_v0  ;;  %434 = vmatprep.mubr.bf16.mxu0 %v3920_v0  ;;  %v3103_v56 = vld [vmem:[#allocation5 + $0x8] ss:$40 sps:$4 sm:$0xff]   ;;  %v3108_v57 = vld [vmem:[#allocation5 + $0x244] ss:$40 sps:$4 sm:$0xff]  }
  0x48   :  { %v3111_v58 = vld [vmem:[#allocation5 + $0x24c] ss:$40 sps:$4 sm:$0xff]  }
  0x4e   :  { %2554 = vmatmul.mubr.msk.bf16.vlgmr.msra.gmra.mxu1 %vm243_vm0, %v3431_v5  ;;  %2558 = vmatmul.mubr.msk.bf16.vlgmr.msra.gmra.mxu0 %vm243_vm0, %v3431_v5 }
  0x4f   :  { %488 = vmatpush1.bf16.msra.mxu1 %v3046_v19  ;;  %561 = vmatpush1.bf16.msra.mxu0 %v3049_v20 }
  0x50   :  { %371 = vmatprep.mubr.bf16.mxu1 %v3920_v0  ;;  %444 = vmatprep.mubr.bf16.mxu0 %v3920_v0 }
  0x51   :  { %489 = vmatprep.subr.bf16.mxu1 %v3054_v21  ;;  %562 = vmatprep.subr.bf16.mxu0 %v3057_v22 }
  0x53   :  { %490 = vmatpush1.bf16.msra.mxu1 %v3052_v23  ;;  %563 = vmatpush1.bf16.msra.mxu0 %v3055_v24 }
  0x54   :  { %1319 = vmatprep.subr.bf16.mxu1 %v3060_v25  ;;  %1372 = vmatprep.subr.bf16.mxu0 %v3063_v26 }
  0x56   :  { %2555 = vmatmul.mubr.msk.bf16.gmra.mxu1 %vm243_vm0, %v3038_v15  ;;  %2559 = vmatmul.mubr.msk.bf16.gmra.mxu0 %vm243_vm0, %v3038_v15 }
  0x57   :  { %381 = vmatprep.mubr.bf16.mxu1 %v3920_v0  ;;  %454 = vmatprep.mubr.bf16.mxu0 %v3920_v0 }
  0x5e   :  { %2556 = vmatmul.mubr.msk.bf16.gmra.mxu1 %vm243_vm0, %v3436_v6  ;;  %2560 = vmatmul.mubr.msk.bf16.gmra.mxu0 %vm243_vm0, %v3436_v6 }
  0x5f   :  { %391 = vmatprep.mubr.bf16.mxu1 %v3920_v0  ;;  %464 = vmatprep.mubr.bf16.mxu0 %v3920_v0 }
  0x66   :  { %2557 = vmatmul.mubr.msk.bf16.gmra.mxu1 %vm243_vm0, %v3039_v17  ;;  %2561 = vmatmul.mubr.msk.bf16.gmra.mxu0 %vm243_vm0, %v3039_v17 }
  0x67   :  { %507 = vmatprep.mubr.bf16.mxu1 %v3920_v0  ;;  %580 = vmatprep.mubr.bf16.mxu0 %v3920_v0 }
  0x6e   :  { %2562 = vmatmul.mubr.msk.bf16.vlgmr.msra.gmra.mxu1 %vm243_vm0, %v3431_v5  ;;  %2566 = vmatmul.mubr.msk.bf16.vlgmr.msra.gmra.mxu0 %vm243_vm0, %v3431_v5 }
  0x6f   :  { %517 = vmatprep.mubr.bf16.mxu1 %v3920_v0  ;;  %590 = vmatprep.mubr.bf16.mxu0 %v3920_v0 }
  0x70   :  { %1320 = vmatpush1.bf16.msra.mxu1 %v3058_v27  ;;  %1373 = vmatpush1.bf16.msra.mxu0 %v3061_v28 }
  0x71   :  { %1321 = vmatprep.subr.bf16.mxu1 %v3066_v29  ;;  %1374 = vmatprep.subr.bf16.mxu0 %v3069_v30 }
  0x74   :  { %1322 = vmatpush1.bf16.msra.mxu1 %v3064_v31  ;;  %1375 = vmatpush1.bf16.msra.mxu0 %v3067_v32 }
  0x75   :  { %1323 = vmatprep.subr.bf16.mxu1 %v3072_v33  ;;  %1376 = vmatprep.subr.bf16.mxu0 %v3075_v34 }
  0x76   :  { %2563 = vmatmul.mubr.msk.bf16.gmra.mxu1 %vm243_vm0, %v3038_v15  ;;  %2567 = vmatmul.mubr.msk.bf16.gmra.mxu0 %vm243_vm0, %v3038_v15 }
  0x77   :  { %527 = vmatprep.mubr.bf16.mxu1 %v3920_v0  ;;  %600 = vmatprep.mubr.bf16.mxu0 %v3920_v0 }
  0x78   :  { %1324 = vmatpush1.bf16.msra.mxu1 %v3070_v35  ;;  %1377 = vmatpush1.bf16.msra.mxu0 %v3073_v36 }
  0x79   :  { %1325 = vmatprep.subr.bf16.mxu1 %v3078_v37  ;;  %1378 = vmatprep.subr.bf16.mxu0 %v3081_v38 }
  0x7c   :  { %1326 = vmatpush1.bf16.msra.mxu1 %v3076_v39  ;;  %1379 = vmatpush1.bf16.msra.mxu0 %v3079_v40 }
  0x7d   :  { %1327 = vmatprep.subr.bf16.mxu1 %v3084_v41  ;;  %1380 = vmatprep.subr.bf16.mxu0 %v3087_v42 }
  0x7e   :  { %2564 = vmatmul.mubr.msk.bf16.gmra.mxu1 %vm243_vm0, %v3436_v6  ;;  %2568 = vmatmul.mubr.msk.bf16.gmra.mxu0 %vm243_vm0, %v3436_v6 }
  0x7f   :  { %537 = vmatprep.mubr.bf16.mxu1 %v3920_v0  ;;  %610 = vmatprep.mubr.bf16.mxu0 %v3920_v0 }
  0x80   :  { %1328 = vmatpush1.bf16.msra.mxu1 %v3082_v43  ;;  %1381 = vmatpush1.bf16.msra.mxu0 %v3085_v44 }
  0x81   :  { %1329 = vmatprep.subr.bf16.mxu1 %v3090_v45  ;;  %1382 = vmatprep.subr.bf16.mxu0 %v3093_v46 }
  0x84   :  { %1330 = vmatpush1.bf16.msra.mxu1 %v3088_v47  ;;  %1383 = vmatpush1.bf16.msra.mxu0 %v3091_v48 }
  0x85   :  { %1331 = vmatprep.subr.bf16.mxu1 %v3096_v49  ;;  %1384 = vmatprep.subr.bf16.mxu0 %v3099_v50 }
  0x86   :  { %2565 = vmatmul.mubr.msk.bf16.gmra.mxu1 %vm243_vm0, %v3039_v17  ;;  %2569 = vmatmul.mubr.msk.bf16.gmra.mxu0 %vm243_vm0, %v3039_v17 }
  0x87   :  { %1351 = vmatprep.mubr.bf16.mxu1 %v3920_v0  ;;  %1404 = vmatprep.mubr.bf16.mxu0 %v3920_v0 }
  0x88   :  { %1332 = vmatpush1.bf16.msra.mxu1 %v3094_v51  ;;  %1385 = vmatpush1.bf16.msra.mxu0 %v3097_v52 }
  0x89   :  { %1333 = vmatprep.subr.bf16.mxu1 %v3102_v53  ;;  %1386 = vmatprep.subr.bf16.mxu0 %v3105_v54 }
  0x8c   :  { %1334 = vmatpush1.bf16.msra.mxu1 %v3100_v55  ;;  %1387 = vmatpush1.bf16.msra.mxu0 %v3103_v56 }
  0x8d   :  { %1425 = vmatprep.subr.bf16.mxu1 %v3108_v57  ;;  %1478 = vmatprep.subr.bf16.mxu0 %v3111_v58 }
  0xfe   :  { %v3494_v59 = vpop.f32.mrf.mxu0  ;;  %v3496_v60 = vpop.f32.mrf.mxu1 }
 0x100   :  { %v3498_v61 = vpop.f32.mrf.mxu0  ;;  %v3500_v62 = vpop.f32.mrf.mxu1 }
 0x102   :  { %v3502_v63 = vpop.f32.mrf.mxu0  ;;  %v3504_v1 = vpop.f32.mrf.mxu1 }
 0x104   :  { %v3506_v2 = vpop.f32.mrf.mxu0  ;;  %v3508_v3 = vpop.f32.mrf.mxu1 }
 0x105   :  { %3922 = vst [vmem:[#allocation15_spill] sm:$0xff] %v3508_v3 }
 0x106   :  { %v300_v4 = vpop.f32.mrf.mxu0  ;;  %v3510_v5 = vpop.f32.mrf.mxu1 }
 0x108   :  { %v302_v6 = vpop.f32.mrf.mxu0  ;;  %v3512_v7 = vpop.f32.mrf.mxu1 }
 0x10a   :  { %v304_v8 = vpop.f32.mrf.mxu0  ;;  %v3514_v9 = vpop.f32.mrf.mxu1 }
 0x10c   :  { %v306_v10 = vpop.f32.mrf.mxu0  ;;  %v3516_v11 = vpop.f32.mrf.mxu1 }
 0x10e   :  { %v363_v12 = vpop.f32.mrf.mxu1  ;;  %v436_v13 = vpop.f32.mrf.mxu0 }
 0x10f   :  { %v762_v46 = vrot.slane %v363_v12, 1  ;;  %v710_v56 = vrot.slane %v436_v13, 1 }
 0x110   :  { %v365_v14 = vpop.f32.mrf.mxu1  ;;  %v438_v15 = vpop.f32.mrf.mxu0 }
 0x111   :  { %v796_v49 = vrot.slane %v365_v14, 1  ;;  %v766_v55 = vadd.f32 %v762_v46, %v304_v8 }
 0x112   :  { %v367_v16 = vpop.f32.mrf.mxu1  ;;  %v440_v17 = vpop.f32.mrf.mxu0 }
 0x113   :  { %v770_v50 = vrot.slane %v440_v17, 1 }
 0x114   :  { %v369_v18 = vpop.f32.mrf.mxu1  ;;  %v442_v19 = vpop.f32.mrf.mxu0 }
 0x115   :  { %v804_v57 = vrot.slane %v442_v19, 1  ;;  %v774_v3 = vadd.f32 %v770_v50, %v766_v55  ;;  %v635_v14 = vadd.f32 %v369_v18, %v3498_v61 }
 0x116   :  { %v373_v20 = vpop.f32.mrf.mxu1  ;;  %v446_v21 = vpop.f32.mrf.mxu0 }
 0x117   :  { %v651_v17 = vadd.f32 %v373_v20, %v3502_v63 }
 0x118   :  { %v375_v22 = vpop.f32.mrf.mxu1  ;;  %v448_v23 = vpop.f32.mrf.mxu0 }
 0x11a   :  { %v377_v24 = vpop.f32.mrf.mxu1  ;;  %v450_v25 = vpop.f32.mrf.mxu0 }
 0x11b   :  { %v706_v53 = vadd.f32 %v377_v24, %v300_v4 }
 0x11c   :  { %v379_v26 = vpop.f32.mrf.mxu1  ;;  %v452_v27 = vpop.f32.mrf.mxu0 }
 0x11d   :  { %v732_v54 = vadd.f32 %v379_v26, %v302_v6  ;;  %v714_v6 = vadd.f32 %v710_v56, %v706_v53 }
 0x11e   :  { %v3518_v28 = vpop.f32.mrf.mxu1  ;;  %v3520_v29 = vpop.f32.mrf.mxu0 }
 0x120   :  { %v3522_v30 = vpop.f32.mrf.mxu1  ;;  %v3524_v31 = vpop.f32.mrf.mxu0 }
 0x121   :  { %v797_v56 = vrot.slane %v3522_v30, 1 }
 0x122   :  { %v3526_v32 = vpop.f32.mrf.mxu1  ;;  %v3528_v33 = vpop.f32.mrf.mxu0 }
 0x124   :  { %v3530_v34 = vpop.f32.mrf.mxu1  ;;  %v3532_v35 = vpop.f32.mrf.mxu0 }
 0x125   :  { %v805_v30 = vrot.slane %v3532_v35, 1  ;;  %v801_v35 = vadd.f32 %v797_v56, %v3516_v11 }
 0x126   :  { %v3534_v36 = vpop.f32.mrf.mxu1  ;;  %v3536_v37 = vpop.f32.mrf.mxu0 }
 0x127   :  { %3923 = vst [vmem:[#allocation16_spill] sm:$0xff] %v3536_v37  ;;  %v652_v11 = vadd.f32 %v3534_v36, %v3504_v1 }
 0x128   :  { %v3538_v38 = vpop.f32.mrf.mxu1  ;;  %v3540_v39 = vpop.f32.mrf.mxu0 }
 0x129   :  { %3924 = vst [vmem:[#allocation17_spill] sm:$0xff] %v3538_v38  ;;  %3925 = vst [vmem:[#allocation18_spill] sm:$0xff] %v3540_v39  ;;  %v621_v38 = vadd.f32 %v367_v16, %v3494_v59 }
 0x12a   :  { %v3542_v40 = vpop.f32.mrf.mxu1  ;;  %v3544_v41 = vpop.f32.mrf.mxu0 }
 0x12b   :  { %3926 = vst [vmem:[#allocation19_spill] sm:$0xff] %v3544_v41  ;;  %v736_v41 = vrot.slane %v438_v15, 1  ;;  %v623_v26 = vadd.f32 %v621_v38, %v446_v21  ;;  %v637_v15 = vadd.f32 %v635_v14, %v448_v23  ;;  %v763_v21 = vrot.slane %v3518_v28, 1 }
 0x12c   :  { %v3546_v42 = vpop.f32.mrf.mxu1  ;;  %v3548_v43 = vpop.f32.mrf.mxu0 }
 0x12d   :  { %3927 = vst [vmem:[#allocation20_spill] sm:$0xff] %v3548_v43  ;;  %v800_v43 = vadd.f32 %v796_v49, %v306_v10  ;;  %v740_v8 = vadd.f32 %v736_v41, %v732_v54  ;;  %v673_v10 = vadd.f32 %v375_v22, %v3506_v2 }
 0x12e   :  { %v509_v44 = vpop.f32.mrf.mxu1  ;;  %v3550_v45 = vpop.f32.mrf.mxu0 }
 0x12f   :  { %v808_v24 = vadd.f32 %v804_v57, %v800_v43  ;;  %v675_v61 = vadd.f32 %v673_v10, %v452_v27  ;;  %v657_v18 = vrot.slane %v509_v44, 1  ;;  %v629_v2 = vrot.slane %v3550_v45, 1 }
 0x130   :  { %v3552_v47 = vpop.f32.mrf.mxu1  ;;  %v3554_v48 = vpop.f32.mrf.mxu0  ;;  %v737_v10 = vrot.slane %v3524_v31, 1  ;;  %v707_v31 = vadd.f32 %v3542_v40, %v3510_v5 }
 0x131   :  { %v679_v22 = vrot.slane %v3552_v47, 1  ;;  %v643_v23 = vrot.slane %v3554_v48, 1 }
 0x132   :  { %v513_v51 = vpop.f32.mrf.mxu1  ;;  %v3556_v52 = vpop.f32.mrf.mxu0 }
 0x133   :  { %v718_v12 = vrot.slane %v513_v51, 1  ;;  %v653_v51 = vadd.f32 %v651_v17, %v450_v25  ;;  %v665_v27 = vrot.slane %v3556_v52, 1 }
 0x134   :  { %v515_v58 = vpop.f32.mrf.mxu1  ;;  %v3558_v0 = vpop.f32.mrf.mxu0 }
 0x135   :  { %v744_v39 = vrot.slane %v515_v58, 1  ;;  %v722_v59 = vadd.f32 %v718_v12, %v714_v6  ;;  %v661_v57 = vadd.f32 %v657_v18, %v653_v51  ;;  %v687_v45 = vrot.slane %v3558_v0, 1 }
 0x136   :  { %v519_v37 = vpop.f32.mrf.mxu1  ;;  %v592_v4 = vpop.f32.mrf.mxu0  ;;  %v711_v0 = vrot.slane %v3520_v29, 1  ;;  %v622_v51 = vadd.f32 %v3526_v32, %v3496_v60  ;;  %v636_v29 = vadd.f32 %v3530_v34, %v3500_v62  ;;  %v3930_v62 = vld [vmem:[#allocation17_spill] sm:$0xff] }
 0x137   :  { %v778_v13 = vrot.slane %v519_v37, 1  ;;  %v726_v19 = vrot.slane %v592_v4, 1  ;;  %v748_v16 = vadd.f32 %v744_v39, %v740_v8  ;;  %v771_v4 = vrot.slane %v3528_v33, 1  ;;  %v3587_v33 = vld [vmem:[%s3910_s2] ss:$0 sm:$0xff] }
 0x138   :  { %v521_v46 = vpop.f32.mrf.mxu1  ;;  %v594_v49 = vpop.f32.mrf.mxu0  ;;  %v715_v1 = vadd.f32 %v711_v0, %v707_v31  ;;  %v3115_v31 = vld [vmem:[#allocation5 + $0x1f8] ss:$40 sps:$4 sm:$0xff]  }
 0x139   :  { %v752_v50 = vrot.slane %v594_v49, 1  ;;  %v782_v63 = vadd.f32 %v778_v13, %v774_v3  ;;  %v812_v20 = vrot.slane %v521_v46, 1  ;;  %v730_v41 = vadd.f32 %v726_v19, %v722_v59 }
 0x13a   :  { %v523_v55 = vpop.f32.mrf.mxu1  ;;  %v596_v53 = vpop.f32.mrf.mxu0  ;;  %v683_v13 = vadd.f32 %v679_v22, %v675_v61  ;;  %v669_v19 = vadd.f32 %v665_v27, %v661_v57 }
 0x13b   :  { %v756_v37 = vadd.f32 %v752_v50, %v748_v16  ;;  %v625_v54 = vadd.f32 %v623_v26, %v523_v55  ;;  %v786_v43 = vrot.slane %v596_v53, 1  ;;  %v816_v58 = vadd.f32 %v812_v20, %v808_v24  ;;  %v3928_v20 = vld [vmem:[#allocation16_spill] sm:$0xff]  ;;  %v3929_v53 = vld [vmem:[#allocation15_spill] sm:$0xff] }
 0x13c   :  { %v525_v25 = vpop.f32.mrf.mxu1  ;;  %v598_v38 = vpop.f32.mrf.mxu0  ;;  %v767_v26 = vadd.f32 %v763_v21, %v3514_v9  ;;  %v691_v59 = vadd.f32 %v687_v45, %v683_v13  ;;  %v733_v50 = vadd.f32 %v3546_v42, %v3512_v7  ;;  %v624_v55 = vadd.f32 %v622_v51, %v3928_v20  ;;  %v3931_v7 = vld [vmem:[#allocation18_spill] sm:$0xff] }
 0x13d   :  { %v758_v3 = vmax.f32 %v730_v41, %v756_v37  ;;  %v790_v39 = vadd.f32 %v786_v43, %v782_v63  ;;  %v639_v44 = vadd.f32 %v637_v15, %v525_v25  ;;  %v820_v12 = vrot.slane %v598_v38, 1  ;;  %v3114_v13 = vld [vmem:[#allocation5 + $0x1f4] ss:$40 sps:$4 sm:$0xff]  }
 0x13e   :  { %v3570_v14 = vpop.f32.mrf.mxu1  ;;  %v3572_v28 = vpop.f32.mrf.mxu0  ;;  %v633_v47 = vadd.f32 %v629_v2, %v625_v54  ;;  %v775_v16 = vadd.f32 %v771_v4, %v767_v26  ;;  %v809_v63 = vadd.f32 %v805_v30, %v801_v35  ;;  %v674_v34 = vadd.f32 %v3930_v62, %v3929_v53  ;;  %v3932_v54 = vld [vmem:[#allocation19_spill] sm:$0xff] }
 0x13f   :  { %v792_v48 = vmax.f32 %v758_v3, %v790_v39  ;;  %v647_v17 = vadd.f32 %v643_v23, %v639_v44  ;;  %v824_v52 = vadd.f32 %v820_v12, %v816_v58  ;;  %v638_v42 = vadd.f32 %v636_v29, %v3931_v7  ;;  %v3112_v29 = vld [vmem:[#allocation5 + $0x1f0] ss:$40 sps:$4 sm:$0xff]   ;;  %v3126_v7 = vld [vmem:[#allocation5 + $0x154] ss:$40 sps:$4 sm:$0xff]  }
 0x140   :  { %v3576_v6 = vpop.f32.mrf.mxu1  ;;  %v3578_v8 = vpop.f32.mrf.mxu0  ;;  %v654_v43 = vadd.f32 %v652_v11, %v3932_v54  ;;  %v741_v36 = vadd.f32 %v737_v10, %v733_v50  ;;  %v658_v22 = vrot.slane %v3570_v14, 1  ;;  %v630_v39 = vrot.slane %v3572_v28, 1  ;;  %v3180_v14 = vld [vmem:[%s3913_s5 + $0x70] sm:$0xff]  }
 0x141   :  { %v649_v24 = vmax.f32 %v633_v47, %v647_v17  ;;  %v826_v15 = vmax.f32 %v792_v48, %v824_v52  ;;  %v680_v56 = vrot.slane %v3576_v6, 1  ;;  %v3106_v48 = vld [vmem:[#allocation5 + $0x240] ss:$40 sps:$4 sm:$0xff]   ;;  %v3117_v6 = vld [vmem:[#allocation5 + $0x1fc] ss:$40 sps:$4 sm:$0xff]  }
 0x142   :  { %v533_v46 = vpop.f32.mrf.mxu1  ;;  %v3589_v49 = vpop.f32.mrf.mxu0  ;;  %v3109_v17 = vld [vmem:[#allocation5 + $0x248] ss:$40 sps:$4 sm:$0xff]  }
 0x143   :  { %v671_v9 = vmax.f32 %v649_v24, %v669_v19  ;;  %v828_v32 = vadd.f32 %v3587_v33, %v826_v15  ;;  %v719_v41 = vrot.slane %v533_v46, 1  ;;  %v644_v19 = vrot.slane %v3578_v8, 1 }
 0x144   :  { %v535_v61 = vpop.f32.mrf.mxu1  ;;  %v3600_v18 = vpop.f32.mrf.mxu0  ;;  %v666_v24 = vrot.slane %v3589_v49, 1 }
 0x145   :  { %v693_v60 = vmax.f32 %v671_v9, %v691_v59  ;;  %v745_v5 = vrot.slane %v535_v61, 1  ;;  %v830_v3 = vmax.f32 %v828_v32, 0.0  ;;  %v723_v57 = vadd.f32 %v719_v41, %v715_v1  ;;  %v3935_v9 = vld [vmem:[#allocation20_spill] sm:$0xff] }
 0x146   :  { %v539_v40 = vpop.f32.mrf.mxu1  ;;  %v612_v37 = vpop.f32.mrf.mxu0  ;;  %v676_v8 = vadd.f32 %v674_v34, %v3935_v9  ;;  %v688_v50 = vrot.slane %v3600_v18, 1  ;;  %v3123_v32 = vld [vmem:[#allocation5 + $0x1ac] ss:$40 sps:$4 sm:$0xff]   ;;  %v3121_v18 = vld [vmem:[#allocation5 + $0x1a8] ss:$40 sps:$4 sm:$0xff]  }
 0x147   :  { %v702_v21 = vadd.f32 %v3587_v33, %v693_v60  ;;  %v779_v2 = vrot.slane %v539_v40, 1  ;;  %v727_v23 = vrot.slane %v612_v37, 1  ;;  %v749_v58 = vadd.f32 %v745_v5, %v741_v36  ;;  %v3120_v60 = vld [vmem:[#allocation5 + $0x1a4] ss:$40 sps:$4 sm:$0xff]   ;;  %v3118_v5 = vld [vmem:[#allocation5 + $0x1a0] ss:$40 sps:$4 sm:$0xff]  }
 0x148   :  { %v541_v25 = vpop.f32.mrf.mxu1  ;;  %v614_v38 = vpop.f32.mrf.mxu0  ;;  %v684_v53 = vadd.f32 %v680_v56, %v676_v8  ;;  %v3132_v36 = vld [vmem:[#allocation5 + $0x104] ss:$40 sps:$4 sm:$0xff]   ;;  %v3139_v56 = vld [vmem:[#allocation5 + $0xb8] ss:$40 sps:$4 sm:$0xff]  }
 0x149   :  { %v704_v27 = vmax.f32 %v702_v21, 0.0  ;;  %v813_v44 = vrot.slane %v541_v25, 1  ;;  %v753_v12 = vrot.slane %v614_v38, 1  ;;  %v783_v52 = vadd.f32 %v779_v2, %v775_v16  ;;  %v3124_v21 = vld [vmem:[#allocation5 + $0x150] ss:$40 sps:$4 sm:$0xff]  }
 0x14a   :  { %v543_v45 = vpop.f32.mrf.mxu1  ;;  %v616_v47 = vpop.f32.mrf.mxu0  ;;  %v731_v26 = vadd.f32 %v727_v23, %v723_v57  ;;  %v662_v16 = vadd.f32 %v658_v22, %v654_v43  ;;  %v692_v40 = vadd.f32 %v688_v50, %v684_v53  ;;  %v3127_v2 = vld [vmem:[#allocation5 + $0x158] ss:$40 sps:$4 sm:$0xff]   ;;  %v3135_v22 = vld [vmem:[#allocation5 + $0x10c] ss:$40 sps:$4 sm:$0xff]  }
 0x14b   :  { %v3620_v4 = vpack.c.bf16 %v830_v3, %v704_v27  ;;  %v626_v28 = vadd.f32 %v624_v55, %v543_v45  ;;  %v787_v30 = vrot.slane %v616_v47, 1  ;;  %v757_v0 = vadd.f32 %v753_v12, %v749_v58  ;;  %v3130_v38 = vld [vmem:[#allocation5 + $0x100] ss:$40 sps:$4 sm:$0xff]   ;;  %v3144_v57 = vld [vmem:[#allocation5 + $0x64] ss:$40 sps:$4 sm:$0xff]  }
 0x14c   :  { %v545_v10 = vpop.f32.mrf.mxu1  ;;  %v618_v15 = vpop.f32.mrf.mxu0  ;;  %v817_v46 = vadd.f32 %v813_v44, %v809_v63  ;;  %v3936_v55 = vmov 0   ;;  %v670_v62 = vadd.f32 %v666_v24, %v662_v16  ;;  %v3133_v27 = vld [vmem:[#allocation5 + $0x108] ss:$40 sps:$4 sm:$0xff]   ;;  %v3141_v44 = vld [vmem:[#allocation5 + $0xbc] ss:$40 sps:$4 sm:$0xff]   ;;  %v3351_v16 = vmov 0.0  }
 0x14d   :  { %v791_v35 = vadd.f32 %v787_v30, %v783_v52  ;;  %v640_v51 = vadd.f32 %v638_v42, %v545_v10  ;;  %v821_v59 = vrot.slane %v618_v15, 1  ;;  %2653 = vmatmul.mubr.msk.bf16.vlgmr.msra.gmra.mxu1 %vm3616_vm2, %v3620_v4  ;;  %2659 = vmatmul.mubr.msk.bf16.vlgmr.msra.gmra.mxu0 %vm3616_vm2, %v3620_v4  ;;  %v759_v49 = vmax.f32 %v731_v26, %v757_v0  ;;  %v3129_v42 = vld [vmem:[#allocation5 + $0x15c] ss:$40 sps:$4 sm:$0xff]   ;;  %v3147_v58 = vld [vmem:[#allocation5 + $0x6c] ss:$40 sps:$4 sm:$0xff]  }
 0x14e   :  { %1426 = vmatpush1.bf16.msra.mxu1 %v3106_v48  ;;  %1479 = vmatpush1.bf16.msra.mxu0 %v3109_v17  ;;  %v634_v61 = vadd.f32 %v630_v39, %v626_v28  ;;  %v3138_v39 = vld [vmem:[#allocation5 + $0xb4] ss:$40 sps:$4 sm:$0xff]   ;;  %v3142_v12 = vld [vmem:[#allocation5 + $0x60] ss:$40 sps:$4 sm:$0xff]   ;;  %v3148_v17 = vld [vmem:[#allocation5 + $0x10] ss:$40 sps:$4 sm:$0xff]  }
 0x14f   :  { %v648_v63 = vadd.f32 %v644_v19, %v640_v51  ;;  %v825_v11 = vadd.f32 %v821_v59, %v817_v46  ;;  %1427 = vmatprep.subr.bf16.mxu1 %v3114_v13  ;;  %1480 = vmatprep.subr.bf16.mxu0 %v3117_v6  ;;  %v793_v20 = vmax.f32 %v759_v49, %v791_v35  ;;  %v3145_v45 = vld [vmem:[#allocation5 + $0x68] ss:$40 sps:$4 sm:$0xff]   ;;  %v3150_v47 = vld [vmem:[#allocation5 + $0x14] ss:$40 sps:$4 sm:$0xff]   ;;  %v3151_v52 = vld [vmem:[#allocation5 + $0x18] ss:$40 sps:$4 sm:$0xff]  }
 0x150   :  { %1361 = vmatprep.mubr.bf16.mxu1 %v3936_v55  ;;  %1414 = vmatprep.mubr.bf16.mxu0 %v3936_v55  ;;  %v3153_v48 = vld [vmem:[#allocation5 + $0x1c] ss:$40 sps:$4 sm:$0xff]   ;;  %v3154_v30 = vld [vmem:[#allocation5 + $0x250] ss:$40 sps:$4 sm:$0xff]   ;;  %v3157_v6 = vld [vmem:[#allocation5 + $0x200] ss:$40 sps:$4 sm:$0xff]  }
 0x151   :  { %v650_v34 = vmax.f32 %v634_v61, %v648_v63  ;;  %v827_v41 = vmax.f32 %v793_v20, %v825_v11  ;;  %v3156_v28 = vld [vmem:[#allocation5 + $0x254] ss:$40 sps:$4 sm:$0xff]   ;;  %v3159_v13 = vld [vmem:[#allocation5 + $0x204] ss:$40 sps:$4 sm:$0xff]   ;;  %v3160_v24 = vld [vmem:[#allocation5 + $0x1b0] ss:$40 sps:$4 sm:$0xff]  }
 0x152   :  { %1428 = vmatpush1.bf16.msra.mxu1 %v3112_v29  ;;  %1481 = vmatpush1.bf16.msra.mxu0 %v3115_v31  ;;  %v3162_v19 = vld [vmem:[#allocation5 + $0x1b4] ss:$40 sps:$4 sm:$0xff]   ;;  %v3165_v26 = vld [vmem:[#allocation5 + $0x164] ss:$40 sps:$4 sm:$0xff]   ;;  %v3163_v0 = vld [vmem:[#allocation5 + $0x160] ss:$40 sps:$4 sm:$0xff]  }
 0x153   :  { %v672_v37 = vmax.f32 %v650_v34, %v670_v62  ;;  %1429 = vmatprep.subr.bf16.mxu1 %v3120_v60  ;;  %1482 = vmatprep.subr.bf16.mxu0 %v3123_v32  ;;  %v829_v43 = vadd.f32 %v3587_v33, %v827_v41  ;;  %v3168_v10 = vld [vmem:[#allocation5 + $0x114] ss:$40 sps:$4 sm:$0xff]   ;;  %v3166_v15 = vld [vmem:[#allocation5 + $0x110] ss:$40 sps:$4 sm:$0xff]   ;;  %v3171_v46 = vld [vmem:[#allocation5 + $0xc4] ss:$40 sps:$4 sm:$0xff]  }
 0x154   :  { %v3169_v35 = vld [vmem:[#allocation5 + $0xc0] ss:$40 sps:$4 sm:$0xff]   ;;  %v3174_v51 = vld [vmem:[#allocation5 + $0x74] ss:$40 sps:$4 sm:$0xff]   ;;  %v3172_v59 = vld [vmem:[#allocation5 + $0x70] ss:$40 sps:$4 sm:$0xff]  }
 0x155   :  { %v694_v54 = vmax.f32 %v672_v37, %v692_v40  ;;  %v831_v25 = vmax.f32 %v829_v43, 0.0  ;;  %v3177_v9 = vld [vmem:[#allocation5 + $0x24] ss:$40 sps:$4 sm:$0xff]   ;;  %v3175_v8 = vld [vmem:[#allocation5 + $0x20] ss:$40 sps:$4 sm:$0xff]   ;;  %v3178_v49 = vld [vmem:[%s3913_s5 + $0x78] sm:$0xff]  }
 0x156   :  { %1430 = vmatpush1.bf16.msra.mxu1 %v3118_v5  ;;  %1483 = vmatpush1.bf16.msra.mxu0 %v3121_v18  ;;  %v3181_v29 = vld [vmem:[%s3913_s5 + $0x30] sm:$0xff]   ;;  %v3182_v31 = vld [vmem:[%s3913_s5 + $0x68] sm:$0xff]   ;;  %v3184_v61 = vld [vmem:[%s3913_s5 + $0x60] sm:$0xff]  }
 0x157   :  { %v703_v1 = vadd.f32 %v3587_v33, %v694_v54  ;;  %1431 = vmatprep.subr.bf16.mxu1 %v3126_v7  ;;  %1484 = vmatprep.subr.bf16.mxu0 %v3129_v42  ;;  %v3136_v33 = vld [vmem:[#allocation5 + $0xb0] ss:$40 sps:$4 sm:$0xff]   ;;  %v3183_v50 = vld [vmem:[%s3913_s5 + $0x28] sm:$0xff]   ;;  %v3185_v63 = vld [vmem:[%s3913_s5 + $0x20] sm:$0xff]  }
 0x158   :  { %v3186_v11 = vld [vmem:[%s3913_s5 + $0x58] sm:$0xff]   ;;  %v3188_v32 = vld [vmem:[%s3913_s5 + $0x50] sm:$0xff]   ;;  %v3191_v53 = vld [vmem:[%s3913_s5 + $0x8] sm:$0xff]  }
 0x159   :  { %v705_v23 = vmax.f32 %v703_v1, 0.0  ;;  %v3187_v60 = vld [vmem:[%s3913_s5 + $0x18] sm:$0xff]   ;;  %v3189_v20 = vld [vmem:[%s3913_s5 + $0x10] sm:$0xff]   ;;  %v3192_v62 = vld [vmem:[%s3913_s5 + $0x40] sm:$0xff]  }
 0x15a   :  { %1432 = vmatpush1.bf16.msra.mxu1 %v3124_v21  ;;  %1485 = vmatpush1.bf16.msra.mxu0 %v3127_v2  ;;  %v3193_v34 = vld [vmem:[%s3913_s5] sm:$0xff]  }
 0x15b   :  { %v3636_v3 = vpack.c.bf16 %v831_v25, %v705_v23  ;;  %1433 = vmatprep.subr.bf16.mxu1 %v3132_v36  ;;  %1486 = vmatprep.subr.bf16.mxu0 %v3135_v22 }
 0x15d   :  { %2656 = vmatmul.mubr.msk.bf16.gmra.mxu1 %vm3616_vm2, %v3636_v3  ;;  %2662 = vmatmul.mubr.msk.bf16.gmra.mxu0 %vm3616_vm2, %v3636_v3 }
 0x15e   :  { %1434 = vmatpush1.bf16.msra.mxu1 %v3130_v38  ;;  %1487 = vmatpush1.bf16.msra.mxu0 %v3133_v27 }
 0x15f   :  { %1435 = vmatprep.subr.bf16.mxu1 %v3138_v39  ;;  %1488 = vmatprep.subr.bf16.mxu0 %v3141_v44 }
 0x160   :  { %1457 = vmatprep.mubr.bf16.mxu1 %v3936_v55  ;;  %1510 = vmatprep.mubr.bf16.mxu0 %v3936_v55 }
 0x162   :  { %1436 = vmatpush1.bf16.msra.mxu1 %v3136_v33  ;;  %1489 = vmatpush1.bf16.msra.mxu0 %v3139_v56 }
 0x163   :  { %1437 = vmatprep.subr.bf16.mxu1 %v3144_v57  ;;  %1490 = vmatprep.subr.bf16.mxu0 %v3147_v58 }
 0x166   :  { %1438 = vmatpush1.bf16.msra.mxu1 %v3142_v12  ;;  %1491 = vmatpush1.bf16.msra.mxu0 %v3145_v45 }
 0x167   :  { %1439 = vmatprep.subr.bf16.mxu1 %v3150_v47  ;;  %1492 = vmatprep.subr.bf16.mxu0 %v3153_v48 }
 0x16a   :  { %1440 = vmatpush1.bf16.msra.mxu1 %v3148_v17  ;;  %1493 = vmatpush1.bf16.msra.mxu0 %v3151_v52 }
 0x16b   :  { %1531 = vmatprep.subr.bf16.mxu1 %v3156_v28  ;;  %2868 = vmatprep.subr.bf16.mxu0 %v3351_v16 }
 0x16d   :  { %2665 = vmatmul.mubr.msk.bf16.vlgmr.msra.gmra.mxu1 %vm3616_vm2, %v3620_v4  ;;  %2671 = vmatmul.mubr.msk.bf16.vlgmr.msra.gmra.mxu0 %vm3616_vm2, %v3620_v4 }
 0x16e   :  { %1532 = vmatpush1.bf16.msra.mxu1 %v3154_v30  ;;  %1467 = vmatprep.mubr.bf16.mxu1 %v3936_v55 }
 0x16f   :  { %1533 = vmatprep.subr.bf16.mxu1 %v3159_v13  ;;  %1520 = vmatprep.mubr.bf16.mxu0 %v3936_v55 }
 0x170   :  { %2869 = vmatpush3.bf16.msra.mxu0 %v3178_v49 }
 0x171   :  { %2870 = vmatprep.subr.bf16.mxu0 %v3351_v16 }
 0x172   :  { %1534 = vmatpush1.bf16.msra.mxu1 %v3157_v6 }
 0x173   :  { %1535 = vmatprep.subr.bf16.mxu1 %v3162_v19 }
 0x174   :  { %2871 = vmatpush3.bf16.msra.mxu0 %v3180_v14 }
 0x175   :  { %2668 = vmatmul.mubr.msk.bf16.gmra.mxu1 %vm3616_vm2, %v3636_v3  ;;  %2674 = vmatmul.mubr.msk.bf16.gmra.mxu0 %vm3616_vm2, %v3636_v3 }
 0x176   :  { %1536 = vmatpush1.bf16.msra.mxu1 %v3160_v24  ;;  %1563 = vmatprep.mubr.bf16.mxu1 %v3936_v55 }
 0x177   :  { %1537 = vmatprep.subr.bf16.mxu1 %v3165_v26  ;;  %2872 = vmatprep.subr.bf16.mxu0 %v3351_v16 }
 0x178   :  { %2873 = vmatpush3.bf16.msra.mxu0 %v3182_v31  ;;  %2884 = vmatprep.mubr.msk.bf16.mxu0 %vm3352_vm3, %v3351_v16 }
 0x179   :  { %2874 = vmatprep.subr.bf16.mxu0 %v3351_v16 }
 0x17a   :  { %1538 = vmatpush1.bf16.msra.mxu1 %v3163_v0 }
 0x17b   :  { %1539 = vmatprep.subr.bf16.mxu1 %v3168_v10 }
 0x17c   :  { %2875 = vmatpush3.bf16.msra.mxu0 %v3184_v61 }
 0x17d   :  { %2876 = vmatprep.subr.bf16.mxu0 %v3351_v16 }
 0x17e   :  { %1540 = vmatpush1.bf16.msra.mxu1 %v3166_v15 }
 0x17f   :  { %1541 = vmatprep.subr.bf16.mxu1 %v3171_v46 }
 0x180   :  { %2877 = vmatpush3.bf16.msra.mxu0 %v3186_v11 }
 0x181   :  { %2878 = vmatprep.subr.bf16.mxu0 %v3351_v16 }
 0x182   :  { %1542 = vmatpush1.bf16.msra.mxu1 %v3169_v35 }
 0x183   :  { %1543 = vmatprep.subr.bf16.mxu1 %v3174_v51 }
 0x184   :  { %2879 = vmatpush3.bf16.msra.mxu0 %v3188_v32 }
 0x185   :  { %2880 = vmatprep.subr.bf16.mxu0 %v3351_v16 }
 0x186   :  { %1544 = vmatpush1.bf16.msra.mxu1 %v3172_v59 }
 0x187   :  { %1545 = vmatprep.subr.bf16.mxu1 %v3177_v9 }
 0x18a   :  { %1546 = vmatpush1.bf16.msra.mxu1 %v3175_v8 }
 0x18b   :  { %2888 = vmatprep.subr.bf16.mxu1 %v3351_v16 }
 0x18d   :  { %2677 = vmatmul.mubr.msk.bf16.vlgmr.msra.gmra.mxu1 %vm3616_vm2, %v3620_v4  ;;  %v3179_v4 = vld [vmem:[%s3913_s5 + $0x38] sm:$0xff]  }
 0x18e   :  { %1573 = vmatprep.mubr.bf16.mxu1 %v3936_v55  ;;  %2889 = vmatpush3.bf16.msra.mxu1 %v3179_v4  ;;  %v3190_v55 = vld [vmem:[%s3913_s5 + $0x48] sm:$0xff]  }
 0x18f   :  { %2890 = vmatprep.subr.bf16.mxu1 %v3351_v16  ;;  %2881 = vmatpush3.bf16.msra.mxu0 %v3190_v55 }
 0x190   :  { %2882 = vmatprep.subr.bf16.mxu0 %v3351_v16 }
 0x192   :  { %2891 = vmatpush3.bf16.msra.mxu1 %v3181_v29 }
 0x193   :  { %2892 = vmatprep.subr.bf16.mxu1 %v3351_v16  ;;  %2883 = vmatpush3.bf16.msra.mxu0 %v3192_v62 }
 0x194   :  { %2908 = vmatprep.subr.bf16.mxu0 %v3351_v16 }
 0x195   :  { %2680 = vmatmul.mubr.msk.bf16.gmra.mxu1 %vm3616_vm2, %v3636_v3 }
 0x196   :  { %2893 = vmatpush3.bf16.msra.mxu1 %v3183_v50  ;;  %2904 = vmatprep.mubr.msk.bf16.mxu1 %vm3352_vm3, %v3351_v16 }
 0x197   :  { %2894 = vmatprep.subr.bf16.mxu1 %v3351_v16 }
 0x19a   :  { %2895 = vmatpush3.bf16.msra.mxu1 %v3185_v63 }
 0x19b   :  { %2896 = vmatprep.subr.bf16.mxu1 %v3351_v16 }
 0x19e   :  { %2897 = vmatpush3.bf16.msra.mxu1 %v3187_v60 }
 0x19f   :  { %2898 = vmatprep.subr.bf16.mxu1 %v3351_v16 }
 0x1a2   :  { %2899 = vmatpush3.bf16.msra.mxu1 %v3189_v20 }
 0x1a3   :  { %2900 = vmatprep.subr.bf16.mxu1 %v3351_v16 }
 0x1a6   :  { %2901 = vmatpush3.bf16.msra.mxu1 %v3191_v53 }
 0x1a7   :  { %2902 = vmatprep.subr.bf16.mxu1 %v3351_v16 }
 0x1aa   :  { %2903 = vmatpush3.bf16.msra.mxu1 %v3193_v34 }
 0x1ab   :  { %2928 = vmatprep.subr.bf16.mxu1 %v3351_v16 }
 0x20d   :  { %v1353_v41 = vpop.f32.mrf.mxu1  ;;  %v1406_v18 = vpop.f32.mrf.mxu0 }
 0x20e   :  { %v1640_v48 = vrot.slane %v1406_v18, 1 }
 0x20f   :  { %v1355_v5 = vpop.f32.mrf.mxu1  ;;  %v1408_v37 = vpop.f32.mrf.mxu0 }
 0x210   :  { %v1674_v13 = vrot.slane %v1408_v37, 1 }
 0x211   :  { %v1357_v40 = vpop.f32.mrf.mxu1  ;;  %v1410_v42 = vpop.f32.mrf.mxu0 }
 0x212   :  { %v1644_v6 = vadd.f32 %v1640_v48, %v1357_v40  ;;  %v1584_v26 = vadd.f32 %v1410_v42, %v1353_v41 }
 0x213   :  { %v1359_v7 = vpop.f32.mrf.mxu1  ;;  %v1412_v43 = vpop.f32.mrf.mxu0 }
 0x214   :  { %v1610_v0 = vadd.f32 %v1412_v43, %v1355_v5  ;;  %v1678_v46 = vadd.f32 %v1674_v13, %v1359_v7 }
 0x21d   :  { %v1363_v54 = vpop.f32.mrf.mxu1  ;;  %v1416_v2 = vpop.f32.mrf.mxu0 }
 0x21e   :  { %v1641_v35 = vrot.slane %v1416_v2, 1 }
 0x21f   :  { %v1365_v21 = vpop.f32.mrf.mxu1  ;;  %v3738_v36 = vpop.f32.mrf.mxu0 }
 0x220   :  { %v1675_v14 = vrot.slane %v3738_v36, 1 }
 0x221   :  { %v1367_v1 = vpop.f32.mrf.mxu1  ;;  %v1420_v23 = vpop.f32.mrf.mxu0 }
 0x222   :  { %v1645_v29 = vadd.f32 %v1641_v35, %v1367_v1  ;;  %v1585_v63 = vadd.f32 %v1420_v23, %v1363_v54 }
 0x223   :  { %v3740_v22 = vpop.f32.mrf.mxu1  ;;  %v1422_v38 = vpop.f32.mrf.mxu0 }
 0x224   :  { %v1611_v7 = vadd.f32 %v1422_v38, %v1365_v21  ;;  %v2681_v38 = vld [vmem:[%s3912_s4] ss:$0 sm:$0xff]  ;;  %s3353_s4 = smov [#allocation10]  }
 0x225   :  { %s2515_s15 = sshll.u32 %s3353_s4, 4  ;;  %s2516_s15 = int_to_ptr.vmem [resolvable:$true] %s2515_s15 }
 0x226   :  { %p3319_p7 = scmp.lt.s32.totalorder %s2516_s15, %s2516_s15 }
 0x22d   :  { %v1459_v25 = vpop.f32.mrf.mxu1  ;;  %v1512_v3 = vpop.f32.mrf.mxu0 }
 0x22e   :  { %v1588_v28 = vrot.slane %v1459_v25, 1  ;;  %v1656_v31 = vrot.slane %v1512_v3, 2 }
 0x22f   :  { %v1461_v27 = vpop.f32.mrf.mxu1  ;;  %v1514_v44 = vpop.f32.mrf.mxu0 }
 0x230   :  { %v1614_v30 = vrot.slane %v1461_v27, 1  ;;  %v1592_v8 = vadd.f32 %v1588_v28, %v1584_v26  ;;  %v1690_v20 = vrot.slane %v1514_v44, 2  ;;  %v1679_v27 = vadd.f32 %v1675_v14, %v3740_v22 }
 0x231   :  { %v1463_v39 = vpop.f32.mrf.mxu1  ;;  %v1516_v56 = vpop.f32.mrf.mxu0 }
 0x232   :  { %v1648_v17 = vrot.slane %v1463_v39, 1  ;;  %v1596_v10 = vrot.slane %v1516_v56, 1  ;;  %v1618_v49 = vadd.f32 %v1614_v30, %v1610_v0 }
 0x233   :  { %v1465_v33 = vpop.f32.mrf.mxu1  ;;  %v1518_v58 = vpop.f32.mrf.mxu0 }
 0x234   :  { %v1682_v19 = vrot.slane %v1465_v33, 1  ;;  %v1622_v15 = vrot.slane %v1518_v58, 1  ;;  %v1652_v51 = vadd.f32 %v1648_v17, %v1644_v6  ;;  %v1600_v11 = vadd.f32 %v1596_v10, %v1592_v8 }
 0x235   :  { %v1469_v57 = vpop.f32.mrf.mxu1  ;;  %v3742_v45 = vpop.f32.mrf.mxu0 }
 0x236   :  { %v1686_v50 = vadd.f32 %v1682_v19, %v1678_v46  ;;  %v1626_v60 = vadd.f32 %v1622_v15, %v1618_v49  ;;  %v1589_v55 = vrot.slane %v1469_v57, 1  ;;  %v1660_v41 = vadd.f32 %v1656_v31, %v1652_v51 }
 0x237   :  { %v1471_v12 = vpop.f32.mrf.mxu1  ;;  %v3744_v52 = vpop.f32.mrf.mxu0 }
 0x238   :  { %v1615_v5 = vrot.slane %v1471_v12, 1  ;;  %v1694_v1 = vadd.f32 %v1690_v20, %v1686_v50  ;;  %v1593_v3 = vadd.f32 %v1589_v55, %v1585_v63  ;;  %v1657_v12 = vrot.slane %v3742_v45, 2  ;;  %v3194_v63 = vld [vmem:[%s3913_s5 + $0xb8] sm:$0xff]  }
 0x239   :  { %v1473_v47 = vpop.f32.mrf.mxu1  ;;  %v1526_v59 = vpop.f32.mrf.mxu0  ;;  %v1691_v22 = vrot.slane %v3744_v52, 2 }
 0x23a   :  { %v1649_v53 = vrot.slane %v1473_v47, 1  ;;  %v1597_v42 = vrot.slane %v1526_v59, 1  ;;  %v1619_v33 = vadd.f32 %v1615_v5, %v1611_v7  ;;  %v3197_v5 = vld [vmem:[%s3913_s5 + $0xf0] sm:$0xff]   ;;  %v3201_v7 = vld [vmem:[%s3913_s5 + $0xe0] sm:$0xff]  }
 0x23b   :  { %v1475_v24 = vpop.f32.mrf.mxu1  ;;  %v1528_v62 = vpop.f32.mrf.mxu0 }
 0x23c   :  { %v1683_v43 = vrot.slane %v1475_v24, 1  ;;  %v1623_v36 = vrot.slane %v1528_v62, 1  ;;  %v1653_v39 = vadd.f32 %v1649_v53, %v1645_v29  ;;  %v1601_v48 = vadd.f32 %v1597_v42, %v1593_v3  ;;  %v3195_v53 = vld [vmem:[%s3913_s5 + $0xf8] sm:$0xff]  }
 0x23d   :  { %v3202_v42 = vld [vmem:[%s3913_s5 + $0x98] sm:$0xff]  }
 0x23e   :  { %v1687_v21 = vadd.f32 %v1683_v43, %v1679_v27  ;;  %v1627_v17 = vadd.f32 %v1623_v36, %v1619_v33  ;;  %v1661_v6 = vadd.f32 %v1657_v12, %v1653_v39  ;;  %v3203_v43 = vld [vmem:[%s3913_s5 + $0xd8] sm:$0xff]   ;;  %v3206_v36 = vld [vmem:[%s3913_s5 + $0x88] sm:$0xff]   ;;  %v3209_v39 = vld [vmem:[%s3913_s5 + $0xc0] sm:$0xff]  }
 0x240   :  { %v1695_v45 = vadd.f32 %v1691_v22, %v1687_v21  ;;  %v3211_v21 = vld [vmem:[%s3913_s5 + $0x130] sm:$0xff]  }
 0x24d   :  { %v1565_v9 = vpop.f32.mrf.mxu1 }
 0x24e   :  { %v1604_v4 = vrot.slane %v1565_v9, 2 }
 0x24f   :  { %v1567_v61 = vpop.f32.mrf.mxu1 }
 0x250   :  { %v1630_v32 = vrot.slane %v1567_v61, 2  ;;  %v1608_v18 = vadd.f32 %v1604_v4, %v1600_v11 }
 0x251   :  { %v1569_v34 = vpop.f32.mrf.mxu1 }
 0x252   :  { %v1634_v40 = vadd.f32 %v1630_v32, %v1626_v60  ;;  %v1664_v37 = vrot.slane %v1569_v34, 2 }
 0x253   :  { %v1571_v2 = vpop.f32.mrf.mxu1 }
 0x254   :  { %v1636_v54 = vmax.f32 %v1608_v18, %v1634_v40  ;;  %v1668_v23 = vadd.f32 %v1664_v37, %v1660_v41  ;;  %v1698_v25 = vrot.slane %v1571_v2, 2  ;;  %v3196_v41 = vld [vmem:[%s3913_s5 + $0xb0] sm:$0xff]   ;;  %v3198_v18 = vld [vmem:[%s3913_s5 + $0xa8] sm:$0xff]   ;;  %v3200_v37 = vld [vmem:[%s3913_s5 + $0xa0] sm:$0xff]  }
 0x255   :  { %v1575_v44 = vpop.f32.mrf.mxu1  ;;  %v3199_v40 = vld [vmem:[%s3913_s5 + $0xe8] sm:$0xff]   ;;  %v3204_v2 = vld [vmem:[%s3913_s5 + $0x90] sm:$0xff]  }
 0x256   :  { %v1670_v56 = vmax.f32 %v1636_v54, %v1668_v23  ;;  %v1702_v57 = vadd.f32 %v1698_v25, %v1694_v1  ;;  %v1605_v58 = vrot.slane %v1575_v44, 2  ;;  %v3205_v1 = vld [vmem:[%s3913_s5 + $0xd0] sm:$0xff]   ;;  %v3207_v54 = vld [vmem:[%s3913_s5 + $0xc8] sm:$0xff]   ;;  %v3208_v25 = vld [vmem:[%s3913_s5 + $0x80] sm:$0xff]  }
 0x257   :  { %v1577_v47 = vpop.f32.mrf.mxu1 }
 0x258   :  { %v1704_v28 = vmax.f32 %v1670_v56, %v1702_v57  ;;  %v1631_v30 = vrot.slane %v1577_v47, 2  ;;  %v1609_v24 = vadd.f32 %v1605_v58, %v1601_v48  ;;  %v3210_v56 = vld [vmem:[%s3913_s5 + $0x138] sm:$0xff]   ;;  %v3213_v47 = vld [vmem:[%s3913_s5 + $0x120] sm:$0xff]  }
 0x259   :  { %v1579_v13 = vpop.f32.mrf.mxu1  ;;  %v3214_v48 = vld [vmem:[%s3913_s5 + $0x118] sm:$0xff]  }
 0x25a   :  { %v1713_v19 = vadd.f32 %v2681_v38, %v1704_v28  ;;  %v1635_v26 = vadd.f32 %v1631_v30, %v1627_v17  ;;  %v1665_v0 = vrot.slane %v1579_v13, 2  ;;  %v3215_v17 = vld [vmem:[%s3913_s5 + $0x110] sm:$0xff]   ;;  %v3216_v28 = vld [vmem:[%s3913_s5 + $0x108] sm:$0xff]   ;;  %v3217_v30 = vld [vmem:[%s3913_s5 + $0x100] sm:$0xff]  }
 0x25b   :  { %v1581_v10 = vpop.f32.mrf.mxu1  ;;  %v3218_v13 = vld [vmem:[#allocation7 + $0x38] sm:$0xff]  }
 0x25c   :  { %v1715_v15 = vmax.f32 %v1713_v19, 0.0  ;;  %v1637_v46 = vmax.f32 %v1609_v24, %v1635_v26  ;;  %v1669_v35 = vadd.f32 %v1665_v0, %v1661_v6  ;;  %v1699_v51 = vrot.slane %v1581_v10, 2  ;;  %v3219_v6 = vld [vmem:[#allocation7 + $0x30] sm:$0xff]   ;;  %v3220_v19 = vld [vmem:[#allocation7 + $0x28] sm:$0xff]   ;;  %v3221_v24 = vld [vmem:[#allocation7 + $0x20] sm:$0xff]  }
 0x25d   :  { %v3222_v26 = vld [vmem:[#allocation7 + $0x18] sm:$0xff]   ;;  %v3223_v0 = vld [vmem:[#allocation7 + $0x10] sm:$0xff]   ;;  %v3224_v10 = vld [vmem:[#allocation7 + $0x8] sm:$0xff]  }
 0x25e   :  { %v1671_v59 = vmax.f32 %v1637_v46, %v1669_v35  ;;  %v1703_v9 = vadd.f32 %v1699_v51, %v1695_v45  ;;  %v1717_v8 = vpack.c.bf16 %v1715_v15, %v1715_v15  ;;  %v3225_v45 = vld [vmem:[#allocation7] sm:$0xff]   ;;  %v3226_v15 = vld [vmem:[#allocation8 + $0x38] sm:$0xff]   ;;  %v3227_v46 = vld [vmem:[#allocation8 + $0x30] sm:$0xff]  }
 0x25f   :  { %v3228_v35 = vld [vmem:[#allocation8 + $0x28] sm:$0xff]   ;;  %v3229_v51 = vld [vmem:[#allocation8 + $0x20] sm:$0xff]  }
 0x260   :  { %v1705_v49 = vmax.f32 %v1671_v59, %v1703_v9  ;;  %v3753_v14 = vunpack.c.l.b16 %v1717_v8  ;;  %v3230_v59 = vld [vmem:[#allocation8 + $0x18] sm:$0xff]   ;;  %v3231_v9 = vld [vmem:[#allocation8 + $0x10] sm:$0xff]  }
 0x262   :  { %v1714_v4 = vadd.f32 %v2681_v38, %v1705_v49  ;;  %v1756_v50 = vrot.slane %v3753_v14, 1  ;;  %v2180_v32 = vrot.slane %v3753_v14, 4  ;;  %v1958_v27 = vrot.slane %v3753_v14, 2  ;;  %v3212_v38 = vld [vmem:[%s3913_s5 + $0x128] sm:$0xff]  }
 0x263   :  { %v2069_v33 = vrot.slane %v3753_v14, 3 }
 0x264   :  { %v1716_v52 = vmax.f32 %v1714_v4, 0.0 }
 0x266   :  { %v1718_v29 = vpack.c.bf16 %v1716_v52, %v1716_v52 }
 0x268   :  { %v3755_v31 = vunpack.c.l.b16 %v1718_v29 }
 0x26a   :  { %v1758_v61 = vsel %vm1757_vm4, %v3755_v31, %v1756_v50  ;;  %v1849_v11 = vrot.slane %v3755_v31, 7  ;;  %v2181_v20 = vrot.slane %v3755_v31, 3  ;;  %v1959_v23 = vrot.slane %v3755_v31, 1 }
 0x26b   :  { %v1759_v60 = vpack.c.b16 %v1758_v61, %v1758_v61  ;;  %v2070_v3 = vrot.slane %v3755_v31, 2 }
 0x26c   :  { %v1850_v55 = vsel %vm1757_vm4, %v1849_v11, %v3753_v14  ;;  %v3772_v34 = vsel %vm1757_vm4, %v2181_v20, %v2180_v32  ;;  %v1960_v44 = vsel %vm1757_vm4, %v1959_v23, %v1958_v27  ;;  %v2787_v23 = vld [vmem:[%s3916_s8] ss:$0 sm:$0xff]  ;;  %s3314_s8 = scalar_lea.vmem %s2516_s15, 32 }
 0x26d   :  { %2885 = vmatmul.mubr.bf16.vlgmr.msra.gmra.mxu0 %v1759_v60  ;;  %v1851_v62 = vpack.c.b16 %v1850_v55, %v1850_v55  ;;  %v2071_v57 = vsel %vm1757_vm4, %v2070_v3, %v2069_v33  ;;  %v1961_v58 = vpack.c.b16 %v1960_v44, %v1960_v44  ;;  %v2183_v22 = vpack.c.b16 %v3772_v34, %v3772_v34  ;;  %p3315_p6 = scmp.ne.s32.totalorder %s2516_s15, %s3314_s8  ;;  %p3320_p8 = scmp.lt.s32.totalorder %s3314_s8, %s3314_s8 }
 0x26e   :  { %2909 = vmatpush3.bf16.msra.mxu0 %v3194_v63  ;;  %2924 = vmatprep.mubr.msk.bf16.mxu0 %vm3352_vm3, %v3351_v16  ;;  %v2072_v12 = vpack.c.b16 %v2071_v57, %v2071_v57  ;;  %v2796_v57 = vld [vmem:[%s3918_s10] ss:$0 sm:$0xff] }
 0x26f   :  { %2905 = vmatmul.mubr.bf16.vlgmr.msra.gmra.mxu1 %v1851_v62  ;;  %2910 = vmatprep.subr.bf16.mxu0 %v3351_v16  ;;  %p3321_p9 = por %p3320_p8, %p3319_p7 }
 0x270   :  { %2929 = vmatpush3.bf16.msra.mxu1 %v3195_v53  ;;  %2944 = vmatprep.mubr.msk.bf16.mxu1 %vm3352_vm3, %v3351_v16 }
 0x271   :  { %2930 = vmatprep.subr.bf16.mxu1 %v3351_v16  ;;  %p3322_p10 = pnand %p3321_p9, %p3315_p6 }
 0x272   :  { %2911 = vmatpush3.bf16.msra.mxu0 %v3196_v41 }
 0x273   :  { %2912 = vmatprep.subr.bf16.mxu0 %v3351_v16 }
 0x274   :  { %2931 = vmatpush3.bf16.msra.mxu1 %v3197_v5 }
 0x275   :  { %2932 = vmatprep.subr.bf16.mxu1 %v3351_v16 }
 0x276   :  { %2913 = vmatpush3.bf16.msra.mxu0 %v3198_v18  ;;  %v2786_v18 = vld [vmem:[%s3914_s6] ss:$0 sm:$0xff] }
 0x277   :  { %2914 = vmatprep.subr.bf16.mxu0 %v3351_v16 }
 0x278   :  { %2933 = vmatpush3.bf16.msra.mxu1 %v3199_v40 }
 0x279   :  { %2934 = vmatprep.subr.bf16.mxu1 %v3351_v16 }
 0x27a   :  { %2915 = vmatpush3.bf16.msra.mxu0 %v3200_v37 }
 0x27b   :  { %2916 = vmatprep.subr.bf16.mxu0 %v3351_v16 }
 0x27c   :  { %2935 = vmatpush3.bf16.msra.mxu1 %v3201_v7 }
 0x27d   :  { %2936 = vmatprep.subr.bf16.mxu1 %v3351_v16 }
 0x27e   :  { %2917 = vmatpush3.bf16.msra.mxu0 %v3202_v42 }
 0x27f   :  { %2918 = vmatprep.subr.bf16.mxu0 %v3351_v16 }
 0x280   :  { %2937 = vmatpush3.bf16.msra.mxu1 %v3203_v43 }
 0x281   :  { %2938 = vmatprep.subr.bf16.mxu1 %v3351_v16 }
 0x282   :  { %2919 = vmatpush3.bf16.msra.mxu0 %v3204_v2 }
 0x283   :  { %2920 = vmatprep.subr.bf16.mxu0 %v3351_v16 }
 0x284   :  { %2939 = vmatpush3.bf16.msra.mxu1 %v3205_v1 }
 0x285   :  { %2940 = vmatprep.subr.bf16.mxu1 %v3351_v16 }
 0x286   :  { %2921 = vmatpush3.bf16.msra.mxu0 %v3206_v36  ;;  %v3232_v36 = vld [vmem:[#allocation8 + $0x8] sm:$0xff]  }
 0x287   :  { %2922 = vmatprep.subr.bf16.mxu0 %v3351_v16 }
 0x288   :  { %2941 = vmatpush3.bf16.msra.mxu1 %v3207_v54  ;;  %v3233_v54 = vld [vmem:[#allocation8] sm:$0xff]  }
 0x289   :  { %2942 = vmatprep.subr.bf16.mxu1 %v3351_v16 }
 0x28a   :  { %2923 = vmatpush3.bf16.msra.mxu0 %v3208_v25 }
 0x28b   :  { %2948 = vmatprep.subr.bf16.mxu0 %v3351_v16 }
 0x28c   :  { %2943 = vmatpush3.bf16.msra.mxu1 %v3209_v39 }
 0x28d   :  { %2925 = vmatmul.mubr.bf16.vlgmr.msra.gmra.mxu0 %v1961_v58  ;;  %2968 = vmatprep.subr.bf16.mxu1 %v3351_v16 }
 0x28e   :  { %2949 = vmatpush3.bf16.msra.mxu0 %v3210_v56  ;;  %2964 = vmatprep.mubr.msk.bf16.mxu0 %vm3352_vm3, %v3351_v16 }
 0x28f   :  { %2945 = vmatmul.mubr.bf16.vlgmr.msra.gmra.mxu1 %v2072_v12  ;;  %2950 = vmatprep.subr.bf16.mxu0 %v3351_v16 }
 0x290   :  { %2984 = vmatprep.mubr.msk.bf16.mxu1 %vm3352_vm3, %v3351_v16  ;;  %2969 = vmatpush3.bf16.msra.mxu1 %v3218_v13 }
 0x291   :  { %2970 = vmatprep.subr.bf16.mxu1 %v3351_v16 }
 0x292   :  { %2951 = vmatpush3.bf16.msra.mxu0 %v3211_v21 }
 0x293   :  { %2952 = vmatprep.subr.bf16.mxu0 %v3351_v16 }
 0x294   :  { %2971 = vmatpush3.bf16.msra.mxu1 %v3219_v6 }
 0x295   :  { %2972 = vmatprep.subr.bf16.mxu1 %v3351_v16 }
 0x296   :  { %2953 = vmatpush3.bf16.msra.mxu0 %v3212_v38 }
 0x297   :  { %2954 = vmatprep.subr.bf16.mxu0 %v3351_v16 }
 0x298   :  { %2973 = vmatpush3.bf16.msra.mxu1 %v3220_v19 }
 0x299   :  { %2974 = vmatprep.subr.bf16.mxu1 %v3351_v16 }
 0x29a   :  { %2955 = vmatpush3.bf16.msra.mxu0 %v3213_v47 }
 0x29b   :  { %2956 = vmatprep.subr.bf16.mxu0 %v3351_v16 }
 0x29c   :  { %2975 = vmatpush3.bf16.msra.mxu1 %v3221_v24 }
 0x29d   :  { %2976 = vmatprep.subr.bf16.mxu1 %v3351_v16 }
 0x29e   :  { %2957 = vmatpush3.bf16.msra.mxu0 %v3214_v48 }
 0x29f   :  { %2958 = vmatprep.subr.bf16.mxu0 %v3351_v16 }
 0x2a0   :  { %2977 = vmatpush3.bf16.msra.mxu1 %v3222_v26 }
 0x2a1   :  { %2978 = vmatprep.subr.bf16.mxu1 %v3351_v16 }
 0x2a2   :  { %2959 = vmatpush3.bf16.msra.mxu0 %v3215_v17 }
 0x2a3   :  { %2960 = vmatprep.subr.bf16.mxu0 %v3351_v16 }
 0x2a4   :  { %2979 = vmatpush3.bf16.msra.mxu1 %v3223_v0 }
 0x2a5   :  { %2980 = vmatprep.subr.bf16.mxu1 %v3351_v16 }
 0x2a6   :  { %2961 = vmatpush3.bf16.msra.mxu0 %v3216_v28 }
 0x2a7   :  { %2962 = vmatprep.subr.bf16.mxu0 %v3351_v16 }
 0x2a8   :  { %2981 = vmatpush3.bf16.msra.mxu1 %v3224_v10 }
 0x2a9   :  { %2982 = vmatprep.subr.bf16.mxu1 %v3351_v16 }
 0x2aa   :  { %2963 = vmatpush3.bf16.msra.mxu0 %v3217_v30 }
 0x2ab   :  { %2988 = vmatprep.subr.bf16.mxu0 %v3351_v16 }
 0x2ac   :  { %2983 = vmatpush3.bf16.msra.mxu1 %v3225_v45 }
 0x2ad   :  { %2965 = vmatmul.mubr.bf16.vlgmr.msra.gmra.mxu0 %v2183_v22 }
 0x2ae   :  { %3004 = vmatprep.mubr.msk.bf16.mxu0 %vm3352_vm3, %v3351_v16  ;;  %2989 = vmatpush3.bf16.msra.mxu0 %v3226_v15 }
 0x2af   :  { %2990 = vmatprep.subr.bf16.mxu0 %v3351_v16 }
 0x2b2   :  { %2991 = vmatpush3.bf16.msra.mxu0 %v3227_v46 }
 0x2b3   :  { %2992 = vmatprep.subr.bf16.mxu0 %v3351_v16 }
 0x2b6   :  { %2993 = vmatpush3.bf16.msra.mxu0 %v3228_v35 }
 0x2b7   :  { %2994 = vmatprep.subr.bf16.mxu0 %v3351_v16 }
 0x2ba   :  { %2995 = vmatpush3.bf16.msra.mxu0 %v3229_v51 }
 0x2bb   :  { %2996 = vmatprep.subr.bf16.mxu0 %v3351_v16 }
 0x2be   :  { %2997 = vmatpush3.bf16.msra.mxu0 %v3230_v59 }
 0x2bf   :  { %2998 = vmatprep.subr.bf16.mxu0 %v3351_v16 }
 0x2c2   :  { %2999 = vmatpush3.bf16.msra.mxu0 %v3231_v9 }
 0x2c3   :  { %3000 = vmatprep.subr.bf16.mxu0 %v3351_v16 }
 0x2c6   :  { %3001 = vmatpush3.bf16.msra.mxu0 %v3232_v36 }
 0x2c7   :  { %3002 = vmatprep.subr.bf16.mxu0 %v3351_v16 }
 0x2ca   :  { %3003 = vmatpush3.bf16.msra.mxu0 %v3233_v54 }
 0x32d   :  { %v1843_v8 = vpop.f32.mrf.mxu0 }
 0x32f   :  { %v2886_v49 = vpop.f32.mrf.mxu0  ;;  %v1935_v4 = vpop.f32.mrf.mxu1 }
 0x330   :  { %v1936_v62 = vadd.f32 %v1935_v4, %v1843_v8 }
 0x331   :  { %v1846_v14 = vpop.f32.mrf.mxu0  ;;  %v2906_v52 = vpop.f32.mrf.mxu1 }
 0x333   :  { %v2887_v29 = vpop.f32.mrf.mxu0  ;;  %v1938_v31 = vpop.f32.mrf.mxu1 }
 0x335   :  { %v2907_v50 = vpop.f32.mrf.mxu1 }
 0x34d   :  { %v2045_v61 = vpop.f32.mrf.mxu0 }
 0x34e   :  { %v2051_v34 = vadd.f32 %v2045_v61, %v1936_v62 }
 0x34f   :  { %v2926_v63 = vpop.f32.mrf.mxu0  ;;  %v2156_v11 = vpop.f32.mrf.mxu1 }
 0x350   :  { %v2162_v41 = vadd.f32 %v2156_v11, %v2051_v34 }
 0x351   :  { %v2048_v60 = vpop.f32.mrf.mxu0  ;;  %v2946_v32 = vpop.f32.mrf.mxu1 }
 0x353   :  { %v2927_v20 = vpop.f32.mrf.mxu0  ;;  %v2159_v55 = vpop.f32.mrf.mxu1 }
 0x355   :  { %v2947_v53 = vpop.f32.mrf.mxu1 }
 0x36d   :  { %v2267_v5 = vpop.f32.mrf.mxu0 }
 0x36e   :  { %v2273_v40 = vadd.f32 %v2267_v5, %v2162_v41 }
 0x36f   :  { %v2966_v37 = vpop.f32.mrf.mxu0 }
 0x370   :  { %v2281_v7 = vadd.f32 %v2786_v18, %v2273_v40 }
 0x371   :  { %v2270_v42 = vpop.f32.mrf.mxu0 }
 0x372   :  { %v2282_v43 = vmax.f32 %v2281_v7, 0.0 }
 0x373   :  { %v2967_v2 = vpop.f32.mrf.mxu0 }
 0x374   :  { %v2283_v1 = vpack.c.bf16 %v2282_v43, %v2282_v43 }
 0x376   :  { %2985 = vmatmul.mubr.bf16.vlgmr.msra.gmra.mxu1 %v2283_v1 }
 0x436   :  { %v2389_v25 = vpop.f32.mrf.mxu1 }
 0x437   :  { %v2390_v27 = vadd.f32 %v2787_v23, %v2389_v25 }
 0x438   :  { %v2986_v3 = vpop.f32.mrf.mxu1 }
 0x439   :  { %v2395_v39 = vmax.f32 %v2390_v27, 0.0 }
 0x43a   :  { %v2392_v44 = vpop.f32.mrf.mxu1 }
 0x43b   :  { %v2396_v33 = vpack.c.bf16 %v2395_v39, %v2395_v39 }
 0x43c   :  { %v2987_v56 = vpop.f32.mrf.mxu1 }
 0x43d   :  { %3005 = vmatmul.mubr.bf16.vlgmr.msra.gmra.mxu0 %v2396_v33 }
 0x4fd   :  { %v2502_v16 = vpop.f32.mrf.mxu0 }
 0x4fe   :  { %v2503_v58 = vadd.f32 %v2796_v57, %v2502_v16 }
 0x4ff   :  { %v3006_v12 = vpop.f32.mrf.mxu0 }
 0x500   :  { %2508 = vst [vmem:[#allocation10] sm:$0x3] %v2503_v58 }
 0x501   :  { %v2505_v21 = vpop.f32.mrf.mxu0 }
 0x502   :  { %3325 = shalt.err (!%p3322_p10)
}
 0x503   :  { %2518 = dma.vmem_to_hbm [thread:$0]  %s2516_s15, 32, %s3919_s11, [#allocation4]   ;;  %v3007_v38 = vpop.f32.mrf.mxu0 }
 0x504   :  { %3340 = dma.done.wait [#allocation4], 32  }
 0x505   :  { %3341 = vsyncadd [#allocation4], 4294967264 }
 0x506   :  { %2522 = vsyncpa [#allocation3], 1 }
 0x507   :  { %2523 = vsyncpa [#allocation6], 1 }
 0x508   :  { %2524 = vsyncpa [#allocation9], 1 }
 0x509   :  { %2525 = vsyncpa [#allocation4], 1 }

</bundles_post_ra>
